<compile_context>
chip_gen: v6e
topology: v6e:2x2x1
jax: 0.10.0
libtpu: 0.0.40
codegen_flags: <defaults>
</compile_context>

<pallas_src>
import functools

import jax
import jax.numpy as jnp
from jax.experimental import pallas as pl
from jax.experimental.pallas import tpu as pltpu


# ---------------------------------------------------------------------------
# Kernel
# ---------------------------------------------------------------------------
def _mlp_logsoftmax_kernel(x_ref, w1_ref, b1_ref, w2_ref, b2_ref, o_ref, *,
                           activation, out_dim):
    """Fused: h = act(x @ W1 + b1); z = h @ W2 + b2; out = log_softmax(z)[:, :out_dim].

    x arrives f32 and is cast to bf16 in-kernel; W1/W2 are bf16 (native MXU
    dtype); accumulation and all elementwise math are f32. The class axis is
    lane-padded to 128 for compute only; padded lanes carry a -1e30 bias so
    they never win the max and contribute exactly 0 to the exp-sum, and only
    the real `out_dim` classes are written back.
    """
    # layer1: (TB, D_in)bf16 @ (D_in, H)bf16 -> f32 accumulate, + (1, H)f32 bias
    x_bf = x_ref[...].astype(jnp.bfloat16)
    h = jnp.dot(x_bf, w1_ref[...], preferred_element_type=jnp.float32)
    h = h + b1_ref[...]

    if activation == "relu":
        h = jnp.maximum(h, 0.0)
    elif activation == "sigmoid":
        # Exact sigmoid via a single EUP transcendental: sigmoid(h) = 0.5*tanh(0.5*h)+0.5
        h = 0.5 * jnp.tanh(0.5 * h) + 0.5
    # else: no activation

    # layer2: (TB, H)bf16 @ (H, OUT_PAD)bf16 -> f32 accumulate, + bias
    z = jnp.dot(h.astype(w2_ref.dtype), w2_ref[...],
                preferred_element_type=jnp.float32)
    z = z + b2_ref[...]

    # Numerically stable log_softmax over the lane-padded class axis.
    z_max = jnp.max(z, axis=-1, keepdims=True)
    shifted = z - z_max
    lse = jnp.log(jnp.sum(jnp.exp(shifted), axis=-1, keepdims=True))

    # Store only the real classes (small masked store; saves ~32x HBM writeback
    # plus the wrapper-side slice dispatch).
    o_ref[...] = (shifted[:, :out_dim] - lse).astype(o_ref.dtype)


# ---------------------------------------------------------------------------
# One-time parameter prep (hoisted out of the hot path)
# ---------------------------------------------------------------------------
def prepare_params(w1, b1, w2, b2):
    """Cast/pad the parameters once. Returns a tuple consumed by the forward."""
    hidden = w1.shape[1]
    out_dim = w2.shape[1]
    out_pad = max(128, pl.cdiv(out_dim, 128) * 128)

    w1_bf = w1.astype(jnp.bfloat16)
    b1_2d = b1.reshape(1, hidden).astype(jnp.float32)
    # Lane-dense class axis for compute: zero weight columns + -1e30 bias so
    # padded classes contribute exp(...) == 0 to the softmax denominator.
    w2_p = jnp.zeros((hidden, out_pad), jnp.bfloat16).at[:, :out_dim].set(
        w2.astype(jnp.bfloat16))
    b2_p = jnp.full((1, out_pad), -1e30, jnp.float32).at[0, :out_dim].set(
        b2.astype(jnp.float32))
    return (w1_bf, b1_2d, w2_p, b2_p, out_dim)


def _num_batch_blocks_for_device():
    """v7x has 2 TensorCores/chip -> split the batch in two parallel tiles.
    v5e/v6e have one TC, where extra grid steps are pure per-step overhead."""
    try:
        kind = jax.devices()[0].device_kind.lower()
    except Exception:
        return 1
    return 2 if "v7" in kind else 1


# ---------------------------------------------------------------------------
# Forward (single pallas_call dispatch)
# ---------------------------------------------------------------------------
def author_classifier_forward(x, prepped, *, activation="relu",
                              num_batch_blocks=None):
    """x: (B, input_dim) f32; prepped: output of prepare_params().
    Returns (B, output_dim) f32 log-probabilities (log_softmax over dim=1)."""
    w1_bf, b1_2d, w2_p, b2_p, out_dim = prepped
    B, d_in = x.shape
    hidden = w1_bf.shape[1]
    out_pad = w2_p.shape[1]

    if num_batch_blocks is None:
        num_batch_blocks = _num_batch_blocks_for_device()

    # Batch tile: whole batch on single-TC chips; ~B/2 (rounded to 8) on v7x.
    if num_batch_blocks <= 1 or B <= 8:
        tb = B
    else:
        tb = min(B, pl.cdiv(pl.cdiv(B, num_batch_blocks), 8) * 8)
    grid = (pl.cdiv(B, tb),)

    # Advisory cost for XLA's scheduler.
    cost = pl.CostEstimate(
        flops=2 * B * (d_in * hidden + hidden * out_pad),
        transcendentals=B * (out_pad + (hidden if activation == "sigmoid" else 0)),
        bytes_accessed=(x.size * 4 + w1_bf.size * 2 + w2_p.size * 2
                        + b1_2d.size * 4 + b2_p.size * 4 + B * out_dim * 4),
    )

    kernel = functools.partial(_mlp_logsoftmax_kernel, activation=activation,
                               out_dim=out_dim)

    return pl.pallas_call(
        kernel,
        out_shape=jax.ShapeDtypeStruct((B, out_dim), jnp.float32),
        grid_spec=pltpu.PrefetchScalarGridSpec(
            num_scalar_prefetch=0,
            grid=grid,
            in_specs=[
                # x: streamed per batch tile (Pallas double-buffers the DMA).
                pl.BlockSpec((tb, d_in), lambda i: (i, 0),
                             memory_space=pltpu.MemorySpace.VMEM),
                # Weights & biases: constant block index -> VMEM-resident.
                pl.BlockSpec((d_in, hidden), lambda i: (0, 0),
                             memory_space=pltpu.MemorySpace.VMEM),
                pl.BlockSpec((1, hidden), lambda i: (0, 0),
                             memory_space=pltpu.MemorySpace.VMEM),
                pl.BlockSpec((hidden, out_pad), lambda i: (0, 0),
                             memory_space=pltpu.MemorySpace.VMEM),
                pl.BlockSpec((1, out_pad), lambda i: (0, 0),
                             memory_space=pltpu.MemorySpace.VMEM),
            ],
            out_specs=pl.BlockSpec((tb, out_dim), lambda i: (i, 0),
                                   memory_space=pltpu.MemorySpace.VMEM),
        ),
        compiler_params=pltpu.CompilerParams(
            # Batch axis is embarrassingly parallel -> shards across v7x's 2 TCs.
            dimension_semantics=("parallel",),
            # Footprint here is <1 MiB; stay well under v7x's 64 MiB physical VMEM.
            vmem_limit_bytes=32 * 1024 * 1024,
        ),
        cost_estimate=cost,
    )(x, w1_bf, b1_2d, w2_p, b2_p)


# ---------------------------------------------------------------------------
# Init + reference
# ---------------------------------------------------------------------------
def init_params(key, input_dim, hidden_size, output_dim):
    """Deterministic PyTorch-style Linear init: U(-1/sqrt(fan_in), 1/sqrt(fan_in))."""
    k1, k2, k3, k4 = jax.random.split(key, 4)
    bound1 = 1.0 / jnp.sqrt(input_dim)
    bound2 = 1.0 / jnp.sqrt(hidden_size)
    w1 = jax.random.uniform(k1, (input_dim, hidden_size), jnp.float32, -bound1, bound1)
    b1 = jax.random.uniform(k2, (hidden_size,), jnp.float32, -bound1, bound1)
    w2 = jax.random.uniform(k3, (hidden_size, output_dim), jnp.float32, -bound2, bound2)
    b2 = jax.random.uniform(k4, (output_dim,), jnp.float32, -bound2, bound2)
    return w1, b1, w2, b2


def _reference(x, w1, b1, w2, b2, activation):
    """Pure-JAX reference in matching (bf16-operand, f32-accumulate) precision."""
    xb = x.astype(jnp.bfloat16)
    h = jnp.dot(xb, w1.astype(jnp.bfloat16),
                preferred_element_type=jnp.float32) + b1
    if activation == "relu":
        h = jnp.maximum(h, 0.0)
    elif activation == "sigmoid":
        h = jax.nn.sigmoid(h)
    z = jnp.dot(h.astype(jnp.bfloat16), w2.astype(jnp.bfloat16),
                preferred_element_type=jnp.float32) + b2
    return jax.nn.log_softmax(z, axis=1)


if __name__ == "__main__":
    # Model dims from the PyTorch module; batch sized so the v7x path exercises
    # a 2-tile parallel grid while v5e/v6e run a single block.
    batch, input_dim, hidden_size, output_dim = 512, 32, 32, 4

    key = jax.random.PRNGKey(0)
    kx, kp = jax.random.split(key)
    x = jax.random.normal(kx, (batch, input_dim), jnp.float32)
    w1, b1, w2, b2 = init_params(kp, input_dim, hidden_size, output_dim)

    # One-time parameter prep (hoisted out of the per-call hot path).
    prepped = prepare_params(w1, b1, w2, b2)
    prepped = jax.tree_util.tree_map(
        lambda a: jax.block_until_ready(a) if isinstance(a, jax.Array) else a,
        prepped)

    # --- relu path (nn.ReLU) ---
    out = author_classifier_forward(x, prepped, activation="relu")
    jax.block_until_ready(out)
    ref = _reference(x, w1, b1, w2, b2, "relu")
    assert out.shape == (batch, output_dim)
    assert bool(jnp.allclose(out, ref, atol=1e-3, rtol=1e-3)), "relu path mismatch"

    # --- sigmoid path (exact tanh form -> tight tolerance) ---
    out_sig = author_classifier_forward(x, prepped, activation="sigmoid")
    jax.block_until_ready(out_sig)
    ref_sig = _reference(x, w1, b1, w2, b2, "sigmoid")
    assert bool(jnp.allclose(out_sig, ref_sig, atol=5e-3, rtol=5e-3)), \
        "sigmoid path mismatch"
    # log-probs must normalize.
    assert bool(jnp.allclose(jnp.exp(out_sig).sum(axis=1), 1.0, atol=1e-3))

    # --- no-activation path (activation=None in the PyTorch module) ---
    out_none = author_classifier_forward(x, prepped, activation="none")
    jax.block_until_ready(out_none)
    ref_none = _reference(x, w1, b1, w2, b2, "none")
    assert bool(jnp.allclose(out_none, ref_none, atol=1e-3, rtol=1e-3)), \
        "no-activation path mismatch"

    print("KERNEL_OK")
</pallas_src>

<mosaic_0001>
module attributes {stable_mosaic.version = 11 : i64} {
  func.func @_mlp_logsoftmax_kernel(%arg0: i32, %arg1: memref<512x32xf32, #tpu.memory_space<vmem>>, %arg2: memref<32x32xbf16, #tpu.memory_space<vmem>>, %arg3: memref<1x32xf32, #tpu.memory_space<vmem>>, %arg4: memref<32x128xbf16, #tpu.memory_space<vmem>>, %arg5: memref<1x128xf32, #tpu.memory_space<vmem>>, %arg6: memref<512x4xf32, #tpu.memory_space<vmem>>) attributes {dimension_semantics = [#tpu.dimension_semantics<parallel>], iteration_bounds = array<i64: 1>, scalar_prefetch = 0 : i64, scratch_operands = 0 : i64, tpu.core_type = #tpu.core_type<tc>, window_params = [{transform_indices = @transform_0, window_bounds = array<i64: 512, 32>}, {pipeline_mode = #tpu.pipeline_mode<synchronous>, transform_indices = @transform_1, window_bounds = array<i64: 32, 32>}, {pipeline_mode = #tpu.pipeline_mode<synchronous>, transform_indices = @transform_2, window_bounds = array<i64: 1, 32>}, {pipeline_mode = #tpu.pipeline_mode<synchronous>, transform_indices = @transform_3, window_bounds = array<i64: 32, 128>}, {pipeline_mode = #tpu.pipeline_mode<synchronous>, transform_indices = @transform_4, window_bounds = array<i64: 1, 128>}, {transform_indices = @transform_5, window_bounds = array<i64: 512, 4>}]} {
    %c0 = arith.constant 0 : index
    %c0_0 = arith.constant 0 : index
    %0 = vector.load %arg1[%c0, %c0_0] : memref<512x32xf32, #tpu.memory_space<vmem>>, vector<512x32xf32>
    %1 = arith.truncf %0 : vector<512x32xf32> to vector<512x32xbf16>
    %c0_1 = arith.constant 0 : index
    %c0_2 = arith.constant 0 : index
    %2 = vector.load %arg2[%c0_1, %c0_2] : memref<32x32xbf16, #tpu.memory_space<vmem>>, vector<32x32xbf16>
    %cst = arith.constant dense<0.000000e+00> : vector<512x32xf32>
    %3 = tpu.matmul %1, %2, %cst {dimension_numbers = #tpu.dot_dimension_numbers<[1], [0], [0], [1], [0, 0, 1, 1], [], []>} : vector<512x32xbf16>, vector<32x32xbf16>, vector<512x32xf32> -> vector<512x32xf32>
    %c0_3 = arith.constant 0 : index
    %c0_4 = arith.constant 0 : index
    %4 = vector.load %arg3[%c0_3, %c0_4] : memref<1x32xf32, #tpu.memory_space<vmem>>, vector<1x32xf32>
    %5 = vector.broadcast %4 : vector<1x32xf32> to vector<512x32xf32>
    %6 = arith.addf %3, %5 : vector<512x32xf32>
    %cst_5 = arith.constant 0.000000e+00 : f32
    %7 = vector.broadcast %cst_5 : f32 to vector<512x32xf32>
    %8 = arith.maximumf %6, %7 : vector<512x32xf32>
    %9 = arith.truncf %8 : vector<512x32xf32> to vector<512x32xbf16>
    %c0_6 = arith.constant 0 : index
    %c0_7 = arith.constant 0 : index
    %10 = vector.load %arg4[%c0_6, %c0_7] : memref<32x128xbf16, #tpu.memory_space<vmem>>, vector<32x128xbf16>
    %cst_8 = arith.constant dense<0.000000e+00> : vector<512x128xf32>
    %11 = tpu.matmul %9, %10, %cst_8 {dimension_numbers = #tpu.dot_dimension_numbers<[1], [0], [0], [1], [0, 0, 1, 1], [], []>} : vector<512x32xbf16>, vector<32x128xbf16>, vector<512x128xf32> -> vector<512x128xf32>
    %c0_9 = arith.constant 0 : index
    %c0_10 = arith.constant 0 : index
    %12 = vector.load %arg5[%c0_9, %c0_10] : memref<1x128xf32, #tpu.memory_space<vmem>>, vector<1x128xf32>
    %13 = vector.broadcast %12 : vector<1x128xf32> to vector<512x128xf32>
    %14 = arith.addf %11, %13 : vector<512x128xf32>
    %cst_11 = arith.constant dense<0xFF800000> : vector<512xf32>
    %15 = vector.multi_reduction <maximumf>, %14, %cst_11 [1] : vector<512x128xf32> to vector<512xf32>
    %16 = vector.shape_cast %15 : vector<512xf32> to vector<512x1xf32>
    %17 = vector.broadcast %16 : vector<512x1xf32> to vector<512x128xf32>
    %18 = arith.subf %14, %17 : vector<512x128xf32>
    %19 = math.exp %18 : vector<512x128xf32>
    %cst_12 = arith.constant dense<0.000000e+00> : vector<512xf32>
    %20 = vector.multi_reduction <add>, %19, %cst_12 [1] : vector<512x128xf32> to vector<512xf32>
    %21 = vector.shape_cast %20 : vector<512xf32> to vector<512x1xf32>
    %22 = math.log %21 : vector<512x1xf32>
    %23 = vector.extract_strided_slice %18 {offsets = [0, 0], sizes = [512, 4], strides = [1, 1]} : vector<512x128xf32> to vector<512x4xf32>
    %24 = vector.broadcast %22 : vector<512x1xf32> to vector<512x4xf32>
    %25 = arith.subf %23, %24 : vector<512x4xf32>
    %c0_13 = arith.constant 0 : index
    %c0_14 = arith.constant 0 : index
    %26 = vector.load %arg6[%c0_13, %c0_14] : memref<512x4xf32, #tpu.memory_space<vmem>>, vector<512x4xf32>
    tpu.vector_store %arg6[%c0_13, %c0_14], %25 {strides = array<i32>} : memref<512x4xf32, #tpu.memory_space<vmem>>, vector<512x4xf32>,
    return
  }
  func.func @transform_0(%arg0: i32) -> (i32, i32) {
    %c0_i32 = arith.constant 0 : i32
    %c0_i32_0 = arith.constant 0 : i32
    return %arg0, %c0_i32 : i32, i32
  }
  func.func @transform_1(%arg0: i32) -> (i32, i32) {
    %c0_i32 = arith.constant 0 : i32
    %c0_i32_0 = arith.constant 0 : i32
    %c0_i32_1 = arith.constant 0 : i32
    return %c0_i32, %c0_i32_0 : i32, i32
  }
  func.func @transform_2(%arg0: i32) -> (i32, i32) {
    %c0_i32 = arith.constant 0 : i32
    %c0_i32_0 = arith.constant 0 : i32
    %c0_i32_1 = arith.constant 0 : i32
    return %c0_i32, %c0_i32_0 : i32, i32
  }
  func.func @transform_3(%arg0: i32) -> (i32, i32) {
    %c0_i32 = arith.constant 0 : i32
    %c0_i32_0 = arith.constant 0 : i32
    %c0_i32_1 = arith.constant 0 : i32
    return %c0_i32, %c0_i32_0 : i32, i32
  }
  func.func @transform_4(%arg0: i32) -> (i32, i32) {
    %c0_i32 = arith.constant 0 : i32
    %c0_i32_0 = arith.constant 0 : i32
    %c0_i32_1 = arith.constant 0 : i32
    return %c0_i32, %c0_i32_0 : i32, i32
  }
  func.func @transform_5(%arg0: i32) -> (i32, i32) {
    %c0_i32 = arith.constant 0 : i32
    %c0_i32_0 = arith.constant 0 : i32
    return %arg0, %c0_i32 : i32, i32
  }
}

</mosaic_0001>

<bundles_post_ra>
// kernel: tpu_custom_call.1
= control target key start
LH: loop header
LB: loop body
LE: loop exit
PB: predicated region body
PF: predicated region fallthrough
CT: control target
= control target key end

     0   :  { %vm140_vm0 = vcmask 261120   ;;  %vm1670_vm1 = vcmask 31744   ;;  %s3477_s1 = inlined_call_operand.vmem [shape: bf16[32,32], index: 1, kind: input, shape index: {}]   ;;  %s3478_s0 = inlined_call_operand.vmem [shape: f32[512,32], index: 0, kind: input, shape index: {}]   ;;  %s3479_s3 = inlined_call_operand.vmem [shape: bf16[32,128], index: 3, kind: input, shape index: {}]   ;;  %s3480_s2 = inlined_call_operand.vmem [shape: f32[1,32], index: 2, kind: input, shape index: {}]   ;;  %s3481_s4 = inlined_call_operand.vmem [shape: f32[1,128], index: 4, kind: input, shape index: {}]   ;;  %s3482_s5 = inlined_call_operand.vmem [shape: f32[512,4], index: 5, kind: output, shape index: {}]  }
   0x1   :  { %v2013_v0 = vld [vmem:[%s3477_s1 + $0x8] sm:$0xff]   ;;  %v2014_v1 = vld [vmem:[%s3477_s1] sm:$0xff]   ;;  %v23_v5 = vld [vmem:[%s3478_s0 + $0x10] sm:$0xff] }
   0x2   :  { %1877 = vmatprep.subr.bf16.mxu0 %v2013_v0  ;;  %v21_v2 = vld [vmem:[%s3478_s0] sm:$0xff]  ;;  %v22_v3 = vld [vmem:[%s3478_s0 + $0x8] sm:$0xff]  ;;  %v24_v6 = vld [vmem:[%s3478_s0 + $0x18] sm:$0xff] }
   0x3   :  { %1878 = vmatpush3.bf16.msra.mxu0 %v2013_v0  ;;  %v85_v4 = vpack.c.bf16 %v22_v3, %v21_v2  ;;  %v25_v7 = vld [vmem:[%s3478_s0 + $0x20] sm:$0xff]  ;;  %v26_v8 = vld [vmem:[%s3478_s0 + $0x28] sm:$0xff]  ;;  %v86_v9 = vpack.c.bf16 %v24_v6, %v23_v5  ;;  %v27_v11 = vld [vmem:[%s3478_s0 + $0x30] sm:$0xff] }
   0x4   :  { %1879 = vmatprep.subr.bf16.mxu0 %v2014_v1  ;;  %v87_v10 = vpack.c.bf16 %v26_v8, %v25_v7  ;;  %v28_v12 = vld [vmem:[%s3478_s0 + $0x38] sm:$0xff]  ;;  %v29_v13 = vld [vmem:[%s3478_s0 + $0x40] sm:$0xff]  ;;  %v30_v14 = vld [vmem:[%s3478_s0 + $0x48] sm:$0xff] }
   0x5   :  { %1881 = vmatprep.mubr.msk.bf16.mxu0 %vm140_vm0, %v85_v4  ;;  %v88_v15 = vpack.c.bf16 %v28_v12, %v27_v11  ;;  %v89_v16 = vpack.c.bf16 %v30_v14, %v29_v13  ;;  %v31_v17 = vld [vmem:[%s3478_s0 + $0x50] sm:$0xff]  ;;  %v32_v18 = vld [vmem:[%s3478_s0 + $0x58] sm:$0xff]  ;;  %v33_v19 = vld [vmem:[%s3478_s0 + $0x60] sm:$0xff] }
   0x6   :  { %v34_v20 = vld [vmem:[%s3478_s0 + $0x68] sm:$0xff]  ;;  %v90_v21 = vpack.c.bf16 %v32_v18, %v31_v17  ;;  %v35_v23 = vld [vmem:[%s3478_s0 + $0x70] sm:$0xff]  ;;  %v36_v24 = vld [vmem:[%s3478_s0 + $0x78] sm:$0xff] }
   0x7   :  { %1880 = vmatpush3.bf16.msra.mxu0 %v2014_v1  ;;  %v91_v22 = vpack.c.bf16 %v34_v20, %v33_v19  ;;  %v37_v25 = vld [vmem:[%s3478_s0 + $0x80] sm:$0xff]  ;;  %v38_v26 = vld [vmem:[%s3478_s0 + $0x88] sm:$0xff]  ;;  %v92_v27 = vpack.c.bf16 %v36_v24, %v35_v23  ;;  %v39_v29 = vld [vmem:[%s3478_s0 + $0x90] sm:$0xff] }
   0x8   :  { %v93_v28 = vpack.c.bf16 %v38_v26, %v37_v25  ;;  %v40_v30 = vld [vmem:[%s3478_s0 + $0x98] sm:$0xff]  ;;  %v41_v31 = vld [vmem:[%s3478_s0 + $0xa0] sm:$0xff]  ;;  %v42_v32 = vld [vmem:[%s3478_s0 + $0xa8] sm:$0xff] }
   0x9   :  { %v94_v33 = vpack.c.bf16 %v40_v30, %v39_v29  ;;  %v95_v34 = vpack.c.bf16 %v42_v32, %v41_v31  ;;  %v43_v35 = vld [vmem:[%s3478_s0 + $0xb0] sm:$0xff]  ;;  %v44_v36 = vld [vmem:[%s3478_s0 + $0xb8] sm:$0xff]  ;;  %v45_v37 = vld [vmem:[%s3478_s0 + $0xc0] sm:$0xff] }
   0xa   :  { %1882 = vmatmul.mubr.msk.bf16.vlgmr.msra.gmra.mxu0 %vm140_vm0, %v86_v9  ;;  %v46_v38 = vld [vmem:[%s3478_s0 + $0xc8] sm:$0xff]  ;;  %v96_v39 = vpack.c.bf16 %v44_v36, %v43_v35  ;;  %v47_v41 = vld [vmem:[%s3478_s0 + $0xd0] sm:$0xff]  ;;  %v48_v42 = vld [vmem:[%s3478_s0 + $0xd8] sm:$0xff] }
   0xb   :  { %1885 = vmatprep.mubr.msk.bf16.mxu0 %vm140_vm0, %v87_v10  ;;  %v97_v40 = vpack.c.bf16 %v46_v38, %v45_v37  ;;  %v49_v43 = vld [vmem:[%s3478_s0 + $0xe0] sm:$0xff]  ;;  %v50_v44 = vld [vmem:[%s3478_s0 + $0xe8] sm:$0xff]  ;;  %v98_v45 = vpack.c.bf16 %v48_v42, %v47_v41  ;;  %v51_v47 = vld [vmem:[%s3478_s0 + $0xf0] sm:$0xff] }
   0xc   :  { %v99_v46 = vpack.c.bf16 %v50_v44, %v49_v43  ;;  %v52_v48 = vld [vmem:[%s3478_s0 + $0xf8] sm:$0xff]  ;;  %v53_v49 = vld [vmem:[%s3478_s0 + $0x100] sm:$0xff]  ;;  %v54_v50 = vld [vmem:[%s3478_s0 + $0x108] sm:$0xff] }
   0xd   :  { %v100_v51 = vpack.c.bf16 %v52_v48, %v51_v47  ;;  %v101_v52 = vpack.c.bf16 %v54_v50, %v53_v49  ;;  %v55_v53 = vld [vmem:[%s3478_s0 + $0x110] sm:$0xff]  ;;  %v56_v54 = vld [vmem:[%s3478_s0 + $0x118] sm:$0xff]  ;;  %v57_v55 = vld [vmem:[%s3478_s0 + $0x120] sm:$0xff] }
   0xe   :  { %v58_v56 = vld [vmem:[%s3478_s0 + $0x128] sm:$0xff]  ;;  %v102_v57 = vpack.c.bf16 %v56_v54, %v55_v53  ;;  %v59_v59 = vld [vmem:[%s3478_s0 + $0x130] sm:$0xff]  ;;  %v60_v60 = vld [vmem:[%s3478_s0 + $0x138] sm:$0xff] }
   0xf   :  { %v103_v58 = vpack.c.bf16 %v58_v56, %v57_v55  ;;  %v61_v61 = vld [vmem:[%s3478_s0 + $0x140] sm:$0xff]  ;;  %v62_v62 = vld [vmem:[%s3478_s0 + $0x148] sm:$0xff]  ;;  %v104_v63 = vpack.c.bf16 %v60_v60, %v59_v59  ;;  %v63_v3 = vld [vmem:[%s3478_s0 + $0x150] sm:$0xff] }
  0x10   :  { %v2015_v0 = vld [vmem:[%s3479_s3 + $0x8] sm:$0xff]   ;;  %v105_v1 = vpack.c.bf16 %v62_v62, %v61_v61  ;;  %v2016_v2 = vld [vmem:[%s3479_s3] sm:$0xff]   ;;  %v64_v4 = vld [vmem:[%s3478_s0 + $0x158] sm:$0xff] }
  0x11   :  { %1945 = vmatprep.subr.bf16.mxu1 %v2015_v0  ;;  %v65_v5 = vld [vmem:[%s3478_s0 + $0x160] sm:$0xff]  ;;  %v66_v6 = vld [vmem:[%s3478_s0 + $0x168] sm:$0xff]  ;;  %v106_v7 = vpack.c.bf16 %v64_v4, %v63_v3  ;;  %v67_v9 = vld [vmem:[%s3478_s0 + $0x170] sm:$0xff] }
  0x12   :  { %1886 = vmatmul.mubr.msk.bf16.gmra.mxu0 %vm140_vm0, %v88_v15  ;;  %1946 = vmatpush3.bf16.msra.mxu1 %v2015_v0  ;;  %v107_v8 = vpack.c.bf16 %v66_v6, %v65_v5  ;;  %v68_v10 = vld [vmem:[%s3478_s0 + $0x178] sm:$0xff]  ;;  %v69_v11 = vld [vmem:[%s3478_s0 + $0x180] sm:$0xff]  ;;  %v70_v12 = vld [vmem:[%s3478_s0 + $0x188] sm:$0xff] }
  0x13   :  { %1889 = vmatprep.mubr.msk.bf16.mxu0 %vm140_vm0, %v89_v16  ;;  %1947 = vmatprep.subr.bf16.mxu1 %v2016_v2  ;;  %v108_v13 = vpack.c.bf16 %v68_v10, %v67_v9  ;;  %v109_v14 = vpack.c.bf16 %v70_v12, %v69_v11  ;;  %v71_v15 = vld [vmem:[%s3478_s0 + $0x190] sm:$0xff]  ;;  %v72_v16 = vld [vmem:[%s3478_s0 + $0x198] sm:$0xff]  ;;  %v73_v17 = vld [vmem:[%s3478_s0 + $0x1a0] sm:$0xff] }
  0x14   :  { %v74_v18 = vld [vmem:[%s3478_s0 + $0x1a8] sm:$0xff]  ;;  %v110_v19 = vpack.c.bf16 %v72_v16, %v71_v15  ;;  %v77_v23 = vld [vmem:[%s3478_s0 + $0x1c0] sm:$0xff] }
  0x15   :  { %v111_v20 = vpack.c.bf16 %v74_v18, %v73_v17  ;;  %v78_v24 = vld [vmem:[%s3478_s0 + $0x1c8] sm:$0xff]  ;;  %v81_v29 = vld [vmem:[%s3478_s0 + $0x1e0] sm:$0xff] }
  0x16   :  { %1948 = vmatpush3.bf16.msra.mxu1 %v2016_v2  ;;  %v113_v26 = vpack.c.bf16 %v78_v24, %v77_v23  ;;  %v82_v30 = vld [vmem:[%s3478_s0 + $0x1e8] sm:$0xff]  ;;  %v2542_v38 = vld [vmem:[%s3480_s2] ss:$0 sm:$0xff] }
  0x17   :  { %v115_v32 = vpack.c.bf16 %v82_v30, %v81_v29 }
  0x1a   :  { %1890 = vmatmul.mubr.msk.bf16.gmra.mxu0 %vm140_vm0, %v90_v21  ;;  %v75_v21 = vld [vmem:[%s3478_s0 + $0x1b0] sm:$0xff] }
  0x1b   :  { %1893 = vmatprep.mubr.msk.bf16.mxu0 %vm140_vm0, %v91_v22  ;;  %v76_v22 = vld [vmem:[%s3478_s0 + $0x1b8] sm:$0xff] }
  0x1c   :  { %v112_v25 = vpack.c.bf16 %v76_v22, %v75_v21 }
  0x22   :  { %1894 = vmatmul.mubr.msk.bf16.gmra.mxu0 %vm140_vm0, %v92_v27  ;;  %v79_v27 = vld [vmem:[%s3478_s0 + $0x1d0] sm:$0xff] }
  0x23   :  { %1897 = vmatprep.mubr.msk.bf16.mxu0 %vm140_vm0, %v93_v28  ;;  %v80_v28 = vld [vmem:[%s3478_s0 + $0x1d8] sm:$0xff] }
  0x24   :  { %v114_v31 = vpack.c.bf16 %v80_v28, %v79_v27 }
  0x2a   :  { %1898 = vmatmul.mubr.msk.bf16.gmra.mxu0 %vm140_vm0, %v94_v33  ;;  %v83_v33 = vld [vmem:[%s3478_s0 + $0x1f0] sm:$0xff] }
  0x2b   :  { %1901 = vmatprep.mubr.msk.bf16.mxu0 %vm140_vm0, %v95_v34  ;;  %v84_v34 = vld [vmem:[%s3478_s0 + $0x1f8] sm:$0xff] }
  0x2c   :  { %v116_v35 = vpack.c.bf16 %v84_v34, %v83_v33 }
  0x32   :  { %1902 = vmatmul.mubr.msk.bf16.gmra.mxu0 %vm140_vm0, %v96_v39 }
  0x33   :  { %1905 = vmatprep.mubr.msk.bf16.mxu0 %vm140_vm0, %v97_v40 }
  0x3a   :  { %1906 = vmatmul.mubr.msk.bf16.gmra.mxu0 %vm140_vm0, %v98_v45 }
  0x3b   :  { %1909 = vmatprep.mubr.msk.bf16.mxu0 %vm140_vm0, %v99_v46 }
  0x42   :  { %1910 = vmatmul.mubr.msk.bf16.gmra.mxu0 %vm140_vm0, %v100_v51 }
  0x43   :  { %1913 = vmatprep.mubr.msk.bf16.mxu0 %vm140_vm0, %v101_v52 }
  0x4a   :  { %1914 = vmatmul.mubr.msk.bf16.gmra.mxu0 %vm140_vm0, %v102_v57 }
  0x4b   :  { %1917 = vmatprep.mubr.msk.bf16.mxu0 %vm140_vm0, %v103_v58 }
  0x52   :  { %1918 = vmatmul.mubr.msk.bf16.gmra.mxu0 %vm140_vm0, %v104_v63 }
  0x53   :  { %1921 = vmatprep.mubr.msk.bf16.mxu0 %vm140_vm0, %v105_v1 }
  0x5a   :  { %1922 = vmatmul.mubr.msk.bf16.gmra.mxu0 %vm140_vm0, %v106_v7 }
  0x5b   :  { %1925 = vmatprep.mubr.msk.bf16.mxu0 %vm140_vm0, %v107_v8 }
  0x62   :  { %1926 = vmatmul.mubr.msk.bf16.gmra.mxu0 %vm140_vm0, %v108_v13 }
  0x63   :  { %1929 = vmatprep.mubr.msk.bf16.mxu0 %vm140_vm0, %v109_v14 }
  0x6a   :  { %1930 = vmatmul.mubr.msk.bf16.gmra.mxu0 %vm140_vm0, %v110_v19 }
  0x6b   :  { %1933 = vmatprep.mubr.msk.bf16.mxu0 %vm140_vm0, %v111_v20 }
  0x72   :  { %1934 = vmatmul.mubr.msk.bf16.gmra.mxu0 %vm140_vm0, %v112_v25 }
  0x73   :  { %1937 = vmatprep.mubr.msk.bf16.mxu0 %vm140_vm0, %v113_v26 }
  0x7a   :  { %1938 = vmatmul.mubr.msk.bf16.gmra.mxu0 %vm140_vm0, %v114_v31 }
  0x7b   :  { %1941 = vmatprep.mubr.msk.bf16.mxu0 %vm140_vm0, %v115_v32 }
  0x82   :  { %1942 = vmatmul.mubr.msk.bf16.gmra.mxu0 %vm140_vm0, %v116_v35 }
  0xca   :  { %v1883_v36 = vpop.f32.mrf.mxu0 }
  0xcb   :  { %v280_v42 = vadd.f32 %v1883_v36, %v2542_v38 }
  0xcc   :  { %v271_v37 = vpop.f32.mrf.mxu0 }
  0xcd   :  { %v272_v40 = vadd.f32 %v2542_v38, %v271_v37  ;;  %v528_v49 = vmax.f32 %v280_v42, 0.0 }
  0xce   :  { %v1884_v39 = vpop.f32.mrf.mxu0 }
  0xcf   :  { %v283_v41 = vadd.f32 %v1884_v39, %v2542_v38  ;;  %v526_v47 = vmax.f32 %v272_v40, 0.0 }
  0xd0   :  { %v274_v43 = vpop.f32.mrf.mxu0 }
  0xd1   :  { %v275_v44 = vadd.f32 %v2542_v38, %v274_v43  ;;  %v529_v45 = vmax.f32 %v283_v41, 0.0 }
  0xd2   :  { %v1887_v46 = vpop.f32.mrf.mxu0 }
  0xd3   :  { %v527_v48 = vmax.f32 %v275_v44, 0.0  ;;  %v591_v52 = vpack.c.bf16 %v529_v45, %v528_v49  ;;  %v296_v56 = vadd.f32 %v1887_v46, %v2542_v38 }
  0xd4   :  { %v287_v50 = vpop.f32.mrf.mxu0 }
  0xd5   :  { %v590_v51 = vpack.c.bf16 %v527_v48, %v526_v47  ;;  %v288_v54 = vadd.f32 %v2542_v38, %v287_v50  ;;  %v532_v63 = vmax.f32 %v296_v56, 0.0 }
  0xd6   :  { %v1888_v53 = vpop.f32.mrf.mxu0 }
  0xd7   :  { %v299_v55 = vadd.f32 %v1888_v53, %v2542_v38  ;;  %1949 = vmatprep.mubr.msk.bf16.mxu1 %vm140_vm0, %v590_v51  ;;  %v530_v61 = vmax.f32 %v288_v54, 0.0 }
  0xd8   :  { %v290_v57 = vpop.f32.mrf.mxu0  ;;  %1950 = vmatmul.mubr.msk.bf16.vlgmr.msra.gmra.mxu1 %vm140_vm0, %v591_v52 }
  0xd9   :  { %v291_v58 = vadd.f32 %v2542_v38, %v290_v57  ;;  %v533_v59 = vmax.f32 %v299_v55, 0.0 }
  0xda   :  { %v1891_v60 = vpop.f32.mrf.mxu0 }
  0xdb   :  { %v531_v62 = vmax.f32 %v291_v58, 0.0  ;;  %v593_v2 = vpack.c.bf16 %v533_v59, %v532_v63  ;;  %v312_v6 = vadd.f32 %v1891_v60, %v2542_v38 }
  0xdc   :  { %v303_v0 = vpop.f32.mrf.mxu0 }
  0xdd   :  { %v592_v1 = vpack.c.bf16 %v531_v62, %v530_v61  ;;  %v304_v4 = vadd.f32 %v2542_v38, %v303_v0  ;;  %v536_v13 = vmax.f32 %v312_v6, 0.0 }
  0xde   :  { %v1892_v3 = vpop.f32.mrf.mxu0 }
  0xdf   :  { %v315_v5 = vadd.f32 %v1892_v3, %v2542_v38  ;;  %1953 = vmatprep.mubr.msk.bf16.mxu1 %vm140_vm0, %v592_v1  ;;  %v534_v11 = vmax.f32 %v304_v4, 0.0 }
  0xe0   :  { %v306_v7 = vpop.f32.mrf.mxu0  ;;  %1954 = vmatmul.mubr.msk.bf16.gmra.mxu1 %vm140_vm0, %v593_v2 }
  0xe1   :  { %v307_v8 = vadd.f32 %v2542_v38, %v306_v7  ;;  %v537_v9 = vmax.f32 %v315_v5, 0.0 }
  0xe2   :  { %v1895_v10 = vpop.f32.mrf.mxu0 }
  0xe3   :  { %v535_v12 = vmax.f32 %v307_v8, 0.0  ;;  %v595_v16 = vpack.c.bf16 %v537_v9, %v536_v13  ;;  %v328_v20 = vadd.f32 %v1895_v10, %v2542_v38 }
  0xe4   :  { %v319_v14 = vpop.f32.mrf.mxu0 }
  0xe5   :  { %v594_v15 = vpack.c.bf16 %v535_v12, %v534_v11  ;;  %v320_v18 = vadd.f32 %v2542_v38, %v319_v14  ;;  %v540_v27 = vmax.f32 %v328_v20, 0.0 }
  0xe6   :  { %v1896_v17 = vpop.f32.mrf.mxu0 }
  0xe7   :  { %v331_v19 = vadd.f32 %v1896_v17, %v2542_v38  ;;  %1957 = vmatprep.mubr.msk.bf16.mxu1 %vm140_vm0, %v594_v15  ;;  %v538_v25 = vmax.f32 %v320_v18, 0.0 }
  0xe8   :  { %v322_v21 = vpop.f32.mrf.mxu0  ;;  %1958 = vmatmul.mubr.msk.bf16.gmra.mxu1 %vm140_vm0, %v595_v16 }
  0xe9   :  { %v323_v22 = vadd.f32 %v2542_v38, %v322_v21  ;;  %v541_v23 = vmax.f32 %v331_v19, 0.0 }
  0xea   :  { %v1899_v24 = vpop.f32.mrf.mxu0 }
  0xeb   :  { %v539_v26 = vmax.f32 %v323_v22, 0.0  ;;  %v597_v30 = vpack.c.bf16 %v541_v23, %v540_v27  ;;  %v344_v34 = vadd.f32 %v1899_v24, %v2542_v38 }
  0xec   :  { %v335_v28 = vpop.f32.mrf.mxu0 }
  0xed   :  { %v596_v29 = vpack.c.bf16 %v539_v26, %v538_v25  ;;  %v336_v32 = vadd.f32 %v2542_v38, %v335_v28  ;;  %v544_v42 = vmax.f32 %v344_v34, 0.0 }
  0xee   :  { %v1900_v31 = vpop.f32.mrf.mxu0 }
  0xef   :  { %v347_v33 = vadd.f32 %v1900_v31, %v2542_v38  ;;  %1961 = vmatprep.mubr.msk.bf16.mxu1 %vm140_vm0, %v596_v29  ;;  %v542_v40 = vmax.f32 %v336_v32, 0.0 }
  0xf0   :  { %v338_v35 = vpop.f32.mrf.mxu0  ;;  %1962 = vmatmul.mubr.msk.bf16.gmra.mxu1 %vm140_vm0, %v597_v30 }
  0xf1   :  { %v339_v36 = vadd.f32 %v2542_v38, %v338_v35  ;;  %v545_v37 = vmax.f32 %v347_v33, 0.0 }
  0xf2   :  { %v1903_v39 = vpop.f32.mrf.mxu0 }
  0xf3   :  { %v543_v41 = vmax.f32 %v339_v36, 0.0  ;;  %v599_v45 = vpack.c.bf16 %v545_v37, %v544_v42  ;;  %v360_v49 = vadd.f32 %v1903_v39, %v2542_v38 }
  0xf4   :  { %v351_v43 = vpop.f32.mrf.mxu0 }
  0xf5   :  { %v598_v44 = vpack.c.bf16 %v543_v41, %v542_v40  ;;  %v352_v47 = vadd.f32 %v2542_v38, %v351_v43  ;;  %v548_v56 = vmax.f32 %v360_v49, 0.0 }
  0xf6   :  { %v1904_v46 = vpop.f32.mrf.mxu0 }
  0xf7   :  { %v363_v48 = vadd.f32 %v1904_v46, %v2542_v38  ;;  %1965 = vmatprep.mubr.msk.bf16.mxu1 %vm140_vm0, %v598_v44  ;;  %v546_v54 = vmax.f32 %v352_v47, 0.0 }
  0xf8   :  { %v354_v50 = vpop.f32.mrf.mxu0  ;;  %1966 = vmatmul.mubr.msk.bf16.gmra.mxu1 %vm140_vm0, %v599_v45 }
  0xf9   :  { %v355_v51 = vadd.f32 %v2542_v38, %v354_v50  ;;  %v549_v52 = vmax.f32 %v363_v48, 0.0 }
  0xfa   :  { %v1907_v53 = vpop.f32.mrf.mxu0 }
  0xfb   :  { %v547_v55 = vmax.f32 %v355_v51, 0.0  ;;  %v601_v59 = vpack.c.bf16 %v549_v52, %v548_v56  ;;  %v376_v63 = vadd.f32 %v1907_v53, %v2542_v38 }
  0xfc   :  { %v367_v57 = vpop.f32.mrf.mxu0 }
  0xfd   :  { %v600_v58 = vpack.c.bf16 %v547_v55, %v546_v54  ;;  %v368_v61 = vadd.f32 %v2542_v38, %v367_v57  ;;  %v552_v6 = vmax.f32 %v376_v63, 0.0 }
  0xfe   :  { %v1908_v60 = vpop.f32.mrf.mxu0 }
  0xff   :  { %v379_v62 = vadd.f32 %v1908_v60, %v2542_v38  ;;  %1969 = vmatprep.mubr.msk.bf16.mxu1 %vm140_vm0, %v600_v58  ;;  %v550_v4 = vmax.f32 %v368_v61, 0.0 }
 0x100   :  { %v370_v0 = vpop.f32.mrf.mxu0  ;;  %1970 = vmatmul.mubr.msk.bf16.gmra.mxu1 %vm140_vm0, %v601_v59 }
 0x101   :  { %v371_v1 = vadd.f32 %v2542_v38, %v370_v0  ;;  %v553_v2 = vmax.f32 %v379_v62, 0.0 }
 0x102   :  { %v1911_v3 = vpop.f32.mrf.mxu0 }
 0x103   :  { %v551_v5 = vmax.f32 %v371_v1, 0.0  ;;  %v603_v9 = vpack.c.bf16 %v553_v2, %v552_v6  ;;  %v392_v13 = vadd.f32 %v1911_v3, %v2542_v38 }
 0x104   :  { %v383_v7 = vpop.f32.mrf.mxu0 }
 0x105   :  { %v602_v8 = vpack.c.bf16 %v551_v5, %v550_v4  ;;  %v384_v11 = vadd.f32 %v2542_v38, %v383_v7  ;;  %v556_v20 = vmax.f32 %v392_v13, 0.0 }
 0x106   :  { %v1912_v10 = vpop.f32.mrf.mxu0 }
 0x107   :  { %v395_v12 = vadd.f32 %v1912_v10, %v2542_v38  ;;  %1973 = vmatprep.mubr.msk.bf16.mxu1 %vm140_vm0, %v602_v8  ;;  %v554_v18 = vmax.f32 %v384_v11, 0.0 }
 0x108   :  { %v386_v14 = vpop.f32.mrf.mxu0  ;;  %1974 = vmatmul.mubr.msk.bf16.gmra.mxu1 %vm140_vm0, %v603_v9 }
 0x109   :  { %v387_v15 = vadd.f32 %v2542_v38, %v386_v14  ;;  %v557_v16 = vmax.f32 %v395_v12, 0.0 }
 0x10a   :  { %v1915_v17 = vpop.f32.mrf.mxu0 }
 0x10b   :  { %v555_v19 = vmax.f32 %v387_v15, 0.0  ;;  %v605_v23 = vpack.c.bf16 %v557_v16, %v556_v20  ;;  %v408_v27 = vadd.f32 %v1915_v17, %v2542_v38 }
 0x10c   :  { %v399_v21 = vpop.f32.mrf.mxu0 }
 0x10d   :  { %v604_v22 = vpack.c.bf16 %v555_v19, %v554_v18  ;;  %v400_v25 = vadd.f32 %v2542_v38, %v399_v21  ;;  %v560_v34 = vmax.f32 %v408_v27, 0.0 }
 0x10e   :  { %v1916_v24 = vpop.f32.mrf.mxu0 }
 0x10f   :  { %v411_v26 = vadd.f32 %v1916_v24, %v2542_v38  ;;  %1977 = vmatprep.mubr.msk.bf16.mxu1 %vm140_vm0, %v604_v22  ;;  %v558_v32 = vmax.f32 %v400_v25, 0.0 }
 0x110   :  { %v402_v28 = vpop.f32.mrf.mxu0  ;;  %1978 = vmatmul.mubr.msk.bf16.gmra.mxu1 %vm140_vm0, %v605_v23 }
 0x111   :  { %v403_v29 = vadd.f32 %v2542_v38, %v402_v28  ;;  %v561_v30 = vmax.f32 %v411_v26, 0.0 }
 0x112   :  { %v1919_v31 = vpop.f32.mrf.mxu0 }
 0x113   :  { %v559_v33 = vmax.f32 %v403_v29, 0.0  ;;  %v607_v37 = vpack.c.bf16 %v561_v30, %v560_v34  ;;  %v424_v42 = vadd.f32 %v1919_v31, %v2542_v38 }
 0x114   :  { %v415_v35 = vpop.f32.mrf.mxu0 }
 0x115   :  { %v606_v36 = vpack.c.bf16 %v559_v33, %v558_v32  ;;  %v416_v40 = vadd.f32 %v2542_v38, %v415_v35  ;;  %v564_v49 = vmax.f32 %v424_v42, 0.0 }
 0x116   :  { %v1920_v39 = vpop.f32.mrf.mxu0 }
 0x117   :  { %v427_v41 = vadd.f32 %v1920_v39, %v2542_v38  ;;  %1981 = vmatprep.mubr.msk.bf16.mxu1 %vm140_vm0, %v606_v36  ;;  %v562_v47 = vmax.f32 %v416_v40, 0.0 }
 0x118   :  { %v418_v43 = vpop.f32.mrf.mxu0  ;;  %1982 = vmatmul.mubr.msk.bf16.gmra.mxu1 %vm140_vm0, %v607_v37 }
 0x119   :  { %v419_v44 = vadd.f32 %v2542_v38, %v418_v43  ;;  %v565_v45 = vmax.f32 %v427_v41, 0.0 }
 0x11a   :  { %v1923_v46 = vpop.f32.mrf.mxu0 }
 0x11b   :  { %v563_v48 = vmax.f32 %v419_v44, 0.0  ;;  %v609_v52 = vpack.c.bf16 %v565_v45, %v564_v49  ;;  %v440_v56 = vadd.f32 %v1923_v46, %v2542_v38 }
 0x11c   :  { %v431_v50 = vpop.f32.mrf.mxu0 }
 0x11d   :  { %v608_v51 = vpack.c.bf16 %v563_v48, %v562_v47  ;;  %v432_v54 = vadd.f32 %v2542_v38, %v431_v50  ;;  %v568_v63 = vmax.f32 %v440_v56, 0.0 }
 0x11e   :  { %v1924_v53 = vpop.f32.mrf.mxu0 }
 0x11f   :  { %v443_v55 = vadd.f32 %v1924_v53, %v2542_v38  ;;  %1985 = vmatprep.mubr.msk.bf16.mxu1 %vm140_vm0, %v608_v51  ;;  %v566_v61 = vmax.f32 %v432_v54, 0.0 }
 0x120   :  { %v434_v57 = vpop.f32.mrf.mxu0  ;;  %1986 = vmatmul.mubr.msk.bf16.gmra.mxu1 %vm140_vm0, %v609_v52 }
 0x121   :  { %v435_v58 = vadd.f32 %v2542_v38, %v434_v57  ;;  %v569_v59 = vmax.f32 %v443_v55, 0.0 }
 0x122   :  { %v1927_v60 = vpop.f32.mrf.mxu0 }
 0x123   :  { %v567_v62 = vmax.f32 %v435_v58, 0.0  ;;  %v611_v2 = vpack.c.bf16 %v569_v59, %v568_v63  ;;  %v456_v6 = vadd.f32 %v1927_v60, %v2542_v38 }
 0x124   :  { %v447_v0 = vpop.f32.mrf.mxu0 }
 0x125   :  { %v610_v1 = vpack.c.bf16 %v567_v62, %v566_v61  ;;  %v448_v4 = vadd.f32 %v2542_v38, %v447_v0  ;;  %v572_v13 = vmax.f32 %v456_v6, 0.0 }
 0x126   :  { %v1928_v3 = vpop.f32.mrf.mxu0 }
 0x127   :  { %v459_v5 = vadd.f32 %v1928_v3, %v2542_v38  ;;  %1989 = vmatprep.mubr.msk.bf16.mxu1 %vm140_vm0, %v610_v1  ;;  %v570_v11 = vmax.f32 %v448_v4, 0.0 }
 0x128   :  { %v450_v7 = vpop.f32.mrf.mxu0  ;;  %1990 = vmatmul.mubr.msk.bf16.gmra.mxu1 %vm140_vm0, %v611_v2 }
 0x129   :  { %v451_v8 = vadd.f32 %v2542_v38, %v450_v7  ;;  %v573_v9 = vmax.f32 %v459_v5, 0.0 }
 0x12a   :  { %v1931_v10 = vpop.f32.mrf.mxu0 }
 0x12b   :  { %v571_v12 = vmax.f32 %v451_v8, 0.0  ;;  %v613_v16 = vpack.c.bf16 %v573_v9, %v572_v13  ;;  %v472_v20 = vadd.f32 %v1931_v10, %v2542_v38  ;;  %v2643_v8 = vld [vmem:[%s3481_s4] ss:$0 sm:$0xff] }
 0x12c   :  { %v463_v14 = vpop.f32.mrf.mxu0 }
 0x12d   :  { %v612_v15 = vpack.c.bf16 %v571_v12, %v570_v11  ;;  %v464_v18 = vadd.f32 %v2542_v38, %v463_v14  ;;  %v576_v27 = vmax.f32 %v472_v20, 0.0 }
 0x12e   :  { %v1932_v17 = vpop.f32.mrf.mxu0 }
 0x12f   :  { %v475_v19 = vadd.f32 %v1932_v17, %v2542_v38  ;;  %1993 = vmatprep.mubr.msk.bf16.mxu1 %vm140_vm0, %v612_v15  ;;  %v574_v25 = vmax.f32 %v464_v18, 0.0 }
 0x130   :  { %v466_v21 = vpop.f32.mrf.mxu0  ;;  %1994 = vmatmul.mubr.msk.bf16.gmra.mxu1 %vm140_vm0, %v613_v16 }
 0x131   :  { %v467_v22 = vadd.f32 %v2542_v38, %v466_v21  ;;  %v577_v23 = vmax.f32 %v475_v19, 0.0 }
 0x132   :  { %v1935_v24 = vpop.f32.mrf.mxu0 }
 0x133   :  { %v575_v26 = vmax.f32 %v467_v22, 0.0  ;;  %v615_v30 = vpack.c.bf16 %v577_v23, %v576_v27  ;;  %v488_v34 = vadd.f32 %v1935_v24, %v2542_v38 }
 0x134   :  { %v479_v28 = vpop.f32.mrf.mxu0 }
 0x135   :  { %v614_v29 = vpack.c.bf16 %v575_v26, %v574_v25  ;;  %v480_v32 = vadd.f32 %v2542_v38, %v479_v28  ;;  %v580_v42 = vmax.f32 %v488_v34, 0.0 }
 0x136   :  { %v1936_v31 = vpop.f32.mrf.mxu0 }
 0x137   :  { %v491_v33 = vadd.f32 %v1936_v31, %v2542_v38  ;;  %1997 = vmatprep.mubr.msk.bf16.mxu1 %vm140_vm0, %v614_v29  ;;  %v578_v40 = vmax.f32 %v480_v32, 0.0 }
 0x138   :  { %v482_v35 = vpop.f32.mrf.mxu0  ;;  %1998 = vmatmul.mubr.msk.bf16.gmra.mxu1 %vm140_vm0, %v615_v30 }
 0x139   :  { %v483_v36 = vadd.f32 %v2542_v38, %v482_v35  ;;  %v581_v37 = vmax.f32 %v491_v33, 0.0 }
 0x13a   :  { %v1939_v39 = vpop.f32.mrf.mxu0 }
 0x13b   :  { %v579_v41 = vmax.f32 %v483_v36, 0.0  ;;  %v617_v45 = vpack.c.bf16 %v581_v37, %v580_v42  ;;  %v504_v49 = vadd.f32 %v1939_v39, %v2542_v38 }
 0x13c   :  { %v495_v43 = vpop.f32.mrf.mxu0 }
 0x13d   :  { %v616_v44 = vpack.c.bf16 %v579_v41, %v578_v40  ;;  %v496_v47 = vadd.f32 %v2542_v38, %v495_v43  ;;  %v584_v56 = vmax.f32 %v504_v49, 0.0 }
 0x13e   :  { %v1940_v46 = vpop.f32.mrf.mxu0 }
 0x13f   :  { %v507_v48 = vadd.f32 %v1940_v46, %v2542_v38  ;;  %2001 = vmatprep.mubr.msk.bf16.mxu1 %vm140_vm0, %v616_v44  ;;  %v582_v54 = vmax.f32 %v496_v47, 0.0 }
 0x140   :  { %v498_v50 = vpop.f32.mrf.mxu0  ;;  %2002 = vmatmul.mubr.msk.bf16.gmra.mxu1 %vm140_vm0, %v617_v45 }
 0x141   :  { %v499_v51 = vadd.f32 %v2542_v38, %v498_v50  ;;  %v585_v52 = vmax.f32 %v507_v48, 0.0 }
 0x142   :  { %v1943_v53 = vpop.f32.mrf.mxu0 }
 0x143   :  { %v583_v55 = vmax.f32 %v499_v51, 0.0  ;;  %v619_v59 = vpack.c.bf16 %v585_v52, %v584_v56  ;;  %v520_v63 = vadd.f32 %v1943_v53, %v2542_v38 }
 0x144   :  { %v511_v57 = vpop.f32.mrf.mxu0 }
 0x145   :  { %v618_v58 = vpack.c.bf16 %v583_v55, %v582_v54  ;;  %v512_v61 = vadd.f32 %v2542_v38, %v511_v57  ;;  %v588_v5 = vmax.f32 %v520_v63, 0.0 }
 0x146   :  { %v1944_v60 = vpop.f32.mrf.mxu0 }
 0x147   :  { %v523_v62 = vadd.f32 %v1944_v60, %v2542_v38  ;;  %2005 = vmatprep.mubr.msk.bf16.mxu1 %vm140_vm0, %v618_v58  ;;  %v586_v3 = vmax.f32 %v512_v61, 0.0 }
 0x148   :  { %v514_v0 = vpop.f32.mrf.mxu0  ;;  %2006 = vmatmul.mubr.msk.bf16.gmra.mxu1 %vm140_vm0, %v619_v59 }
 0x149   :  { %v515_v1 = vadd.f32 %v2542_v38, %v514_v0  ;;  %v589_v2 = vmax.f32 %v523_v62, 0.0 }
 0x14b   :  { %v587_v4 = vmax.f32 %v515_v1, 0.0  ;;  %v621_v7 = vpack.c.bf16 %v589_v2, %v588_v5 }
 0x14d   :  { %v620_v6 = vpack.c.bf16 %v587_v4, %v586_v3 }
 0x14f   :  { %2009 = vmatprep.mubr.msk.bf16.mxu1 %vm140_vm0, %v620_v6 }
 0x150   :  { %2010 = vmatmul.mubr.msk.bf16.gmra.mxu1 %vm140_vm0, %v621_v7 }
 0x198   :  { %v1951_v9 = vpop.f32.mrf.mxu1 }
 0x199   :  { %v2646_v10 = vadd.f32 %v1951_v9, %v2643_v8 }
 0x19a   :  { %v775_v38 = vpop.f32.mrf.mxu1 }
 0x19b   :  { %v2649_v11 = vadd.f32 %v2643_v8, %v775_v38  ;;  %1034 = vmax.xlane.f32.xlu1 %v2646_v10 }
 0x19c   :  { %v1952_v12 = vpop.f32.mrf.mxu1 }
 0x19d   :  { %v2653_v13 = vadd.f32 %v1952_v12, %v2643_v8  ;;  %1030 = vmax.xlane.f32.xlu0 %v2649_v11 }
 0x19e   :  { %v778_v14 = vpop.f32.mrf.mxu1 }
 0x19f   :  { %v2657_v15 = vadd.f32 %v2643_v8, %v778_v14  ;;  %1036 = vmax.xlane.f32.xlu1 %v2653_v13 }
 0x1a0   :  { %v1955_v16 = vpop.f32.mrf.mxu1 }
 0x1a1   :  { %1032 = vmax.xlane.f32.xlu0 %v2657_v15  ;;  %v2662_v18 = vadd.f32 %v1955_v16, %v2643_v8 }
 0x1a2   :  { %v791_v17 = vpop.f32.mrf.mxu1 }
 0x1a3   :  { %v2669_v22 = vadd.f32 %v2643_v8, %v791_v17 }
 0x1a4   :  { %v1956_v19 = vpop.f32.mrf.mxu1 }
 0x1a5   :  { %v2665_v20 = vadd.f32 %v1956_v19, %v2643_v8  ;;  %1042 = vmax.xlane.f32.xlu0 %v2662_v18 }
 0x1a6   :  { %v794_v21 = vpop.f32.mrf.mxu1 }
 0x1a7   :  { %1044 = vmax.xlane.f32.xlu1 %v2665_v20  ;;  %v2673_v24 = vadd.f32 %v2643_v8, %v794_v21 }
 0x1a8   :  { %v1959_v23 = vpop.f32.mrf.mxu1 }
 0x1a9   :  { %1038 = vmax.xlane.f32.xlu0 %v2669_v22  ;;  %v2677_v26 = vadd.f32 %v1959_v23, %v2643_v8 }
 0x1aa   :  { %v807_v25 = vpop.f32.mrf.mxu1 }
 0x1ab   :  { %1040 = vmax.xlane.f32.xlu1 %v2673_v24  ;;  %v2685_v30 = vadd.f32 %v2643_v8, %v807_v25 }
 0x1ac   :  { %v1960_v27 = vpop.f32.mrf.mxu1 }
 0x1ad   :  { %v2681_v28 = vadd.f32 %v1960_v27, %v2643_v8  ;;  %1050 = vmax.xlane.f32.xlu0 %v2677_v26 }
 0x1ae   :  { %v810_v29 = vpop.f32.mrf.mxu1 }
 0x1af   :  { %1052 = vmax.xlane.f32.xlu1 %v2681_v28  ;;  %v2689_v32 = vadd.f32 %v2643_v8, %v810_v29 }
 0x1b0   :  { %v1963_v31 = vpop.f32.mrf.mxu1 }
 0x1b1   :  { %1046 = vmax.xlane.f32.xlu0 %v2685_v30  ;;  %v2693_v34 = vadd.f32 %v1963_v31, %v2643_v8 }
 0x1b2   :  { %v823_v33 = vpop.f32.mrf.mxu1 }
 0x1b3   :  { %1048 = vmax.xlane.f32.xlu1 %v2689_v32  ;;  %v2701_v39 = vadd.f32 %v2643_v8, %v823_v33 }
 0x1b4   :  { %v1964_v35 = vpop.f32.mrf.mxu1 }
 0x1b5   :  { %v2697_v36 = vadd.f32 %v1964_v35, %v2643_v8  ;;  %1058 = vmax.xlane.f32.xlu0 %v2693_v34 }
 0x1b6   :  { %v826_v37 = vpop.f32.mrf.mxu1 }
 0x1b7   :  { %1060 = vmax.xlane.f32.xlu1 %v2697_v36  ;;  %v2705_v41 = vadd.f32 %v2643_v8, %v826_v37 }
 0x1b8   :  { %v1967_v40 = vpop.f32.mrf.mxu1 }
 0x1b9   :  { %1054 = vmax.xlane.f32.xlu0 %v2701_v39  ;;  %v2709_v43 = vadd.f32 %v1967_v40, %v2643_v8 }
 0x1ba   :  { %v839_v42 = vpop.f32.mrf.mxu1 }
 0x1bb   :  { %1056 = vmax.xlane.f32.xlu1 %v2705_v41  ;;  %v2717_v47 = vadd.f32 %v2643_v8, %v839_v42 }
 0x1bc   :  { %v1968_v44 = vpop.f32.mrf.mxu1 }
 0x1bd   :  { %v2713_v45 = vadd.f32 %v1968_v44, %v2643_v8  ;;  %1066 = vmax.xlane.f32.xlu0 %v2709_v43 }
 0x1be   :  { %v842_v46 = vpop.f32.mrf.mxu1 }
 0x1bf   :  { %1068 = vmax.xlane.f32.xlu1 %v2713_v45  ;;  %v2721_v49 = vadd.f32 %v2643_v8, %v842_v46 }
 0x1c0   :  { %v1971_v48 = vpop.f32.mrf.mxu1 }
 0x1c1   :  { %1062 = vmax.xlane.f32.xlu0 %v2717_v47  ;;  %v2725_v51 = vadd.f32 %v1971_v48, %v2643_v8 }
 0x1c2   :  { %v855_v50 = vpop.f32.mrf.mxu1 }
 0x1c3   :  { %1064 = vmax.xlane.f32.xlu1 %v2721_v49  ;;  %v2733_v55 = vadd.f32 %v2643_v8, %v855_v50 }
 0x1c4   :  { %v1972_v52 = vpop.f32.mrf.mxu1 }
 0x1c5   :  { %v2729_v53 = vadd.f32 %v1972_v52, %v2643_v8  ;;  %1074 = vmax.xlane.f32.xlu0 %v2725_v51 }
 0x1c6   :  { %v858_v54 = vpop.f32.mrf.mxu1 }
 0x1c7   :  { %1076 = vmax.xlane.f32.xlu1 %v2729_v53  ;;  %v2737_v57 = vadd.f32 %v2643_v8, %v858_v54 }
 0x1c8   :  { %v1975_v56 = vpop.f32.mrf.mxu1 }
 0x1c9   :  { %1070 = vmax.xlane.f32.xlu0 %v2733_v55  ;;  %v2741_v59 = vadd.f32 %v1975_v56, %v2643_v8 }
 0x1ca   :  { %v871_v58 = vpop.f32.mrf.mxu1 }
 0x1cb   :  { %1072 = vmax.xlane.f32.xlu1 %v2737_v57  ;;  %v2749_v63 = vadd.f32 %v2643_v8, %v871_v58 }
 0x1cc   :  { %v1976_v60 = vpop.f32.mrf.mxu1 }
 0x1cd   :  { %v2745_v61 = vadd.f32 %v1976_v60, %v2643_v8  ;;  %1082 = vmax.xlane.f32.xlu0 %v2741_v59 }
 0x1ce   :  { %v874_v62 = vpop.f32.mrf.mxu1 }
 0x1cf   :  { %1084 = vmax.xlane.f32.xlu1 %v2745_v61  ;;  %v2753_v1 = vadd.f32 %v2643_v8, %v874_v62 }
 0x1d0   :  { %v1979_v0 = vpop.f32.mrf.mxu1 }
 0x1d1   :  { %1078 = vmax.xlane.f32.xlu0 %v2749_v63  ;;  %v2757_v3 = vadd.f32 %v1979_v0, %v2643_v8 }
 0x1d2   :  { %v887_v2 = vpop.f32.mrf.mxu1 }
 0x1d3   :  { %1080 = vmax.xlane.f32.xlu1 %v2753_v1  ;;  %v2765_v7 = vadd.f32 %v2643_v8, %v887_v2 }
 0x1d4   :  { %v1980_v4 = vpop.f32.mrf.mxu1 }
 0x1d5   :  { %v2761_v5 = vadd.f32 %v1980_v4, %v2643_v8  ;;  %1090 = vmax.xlane.f32.xlu0 %v2757_v3 }
 0x1d6   :  { %v890_v6 = vpop.f32.mrf.mxu1 }
 0x1d7   :  { %1092 = vmax.xlane.f32.xlu1 %v2761_v5  ;;  %v2769_v38 = vadd.f32 %v2643_v8, %v890_v6 }
 0x1d8   :  { %v1983_v9 = vpop.f32.mrf.mxu1 }
 0x1d9   :  { %1086 = vmax.xlane.f32.xlu0 %v2765_v7  ;;  %v2773_v14 = vadd.f32 %v1983_v9, %v2643_v8 }
 0x1da   :  { %v903_v12 = vpop.f32.mrf.mxu1 }
 0x1db   :  { %1088 = vmax.xlane.f32.xlu1 %v2769_v38  ;;  %v2781_v21 = vadd.f32 %v2643_v8, %v903_v12 }
 0x1dc   :  { %v1984_v16 = vpop.f32.mrf.mxu1 }
 0x1dd   :  { %v2777_v17 = vadd.f32 %v1984_v16, %v2643_v8  ;;  %1098 = vmax.xlane.f32.xlu0 %v2773_v14 }
 0x1de   :  { %v906_v19 = vpop.f32.mrf.mxu1 }
 0x1df   :  { %1100 = vmax.xlane.f32.xlu1 %v2777_v17  ;;  %v2785_v25 = vadd.f32 %v2643_v8, %v906_v19 }
 0x1e0   :  { %v1987_v23 = vpop.f32.mrf.mxu1 }
 0x1e1   :  { %1094 = vmax.xlane.f32.xlu0 %v2781_v21  ;;  %v2789_v29 = vadd.f32 %v1987_v23, %v2643_v8 }
 0x1e2   :  { %v919_v27 = vpop.f32.mrf.mxu1 }
 0x1e3   :  { %1096 = vmax.xlane.f32.xlu1 %v2785_v25  ;;  %v2797_v37 = vadd.f32 %v2643_v8, %v919_v27 }
 0x1e4   :  { %v1988_v31 = vpop.f32.mrf.mxu1 }
 0x1e5   :  { %v2793_v33 = vadd.f32 %v1988_v31, %v2643_v8  ;;  %1106 = vmax.xlane.f32.xlu0 %v2789_v29 }
 0x1e6   :  { %v922_v35 = vpop.f32.mrf.mxu1 }
 0x1e7   :  { %1108 = vmax.xlane.f32.xlu1 %v2793_v33  ;;  %v2801_v42 = vadd.f32 %v2643_v8, %v922_v35 }
 0x1e8   :  { %v1991_v40 = vpop.f32.mrf.mxu1 }
 0x1e9   :  { %1102 = vmax.xlane.f32.xlu0 %v2797_v37  ;;  %v2805_v46 = vadd.f32 %v1991_v40, %v2643_v8 }
 0x1ea   :  { %v935_v44 = vpop.f32.mrf.mxu1 }
 0x1eb   :  { %1104 = vmax.xlane.f32.xlu1 %v2801_v42  ;;  %v2813_v54 = vadd.f32 %v2643_v8, %v935_v44 }
 0x1ec   :  { %v1992_v48 = vpop.f32.mrf.mxu1 }
 0x1ed   :  { %v2809_v50 = vadd.f32 %v1992_v48, %v2643_v8  ;;  %1114 = vmax.xlane.f32.xlu0 %v2805_v46 }
 0x1ee   :  { %v938_v52 = vpop.f32.mrf.mxu1 }
 0x1ef   :  { %1116 = vmax.xlane.f32.xlu1 %v2809_v50  ;;  %v2817_v58 = vadd.f32 %v2643_v8, %v938_v52 }
 0x1f0   :  { %v1995_v56 = vpop.f32.mrf.mxu1 }
 0x1f1   :  { %1110 = vmax.xlane.f32.xlu0 %v2813_v54  ;;  %v2821_v62 = vadd.f32 %v1995_v56, %v2643_v8 }
 0x1f2   :  { %v951_v60 = vpop.f32.mrf.mxu1 }
 0x1f3   :  { %1112 = vmax.xlane.f32.xlu1 %v2817_v58  ;;  %v2829_v6 = vadd.f32 %v2643_v8, %v951_v60 }
 0x1f4   :  { %v1996_v0 = vpop.f32.mrf.mxu1 }
 0x1f5   :  { %v2825_v2 = vadd.f32 %v1996_v0, %v2643_v8  ;;  %1122 = vmax.xlane.f32.xlu0 %v2821_v62 }
 0x1f6   :  { %v954_v4 = vpop.f32.mrf.mxu1 }
 0x1f7   :  { %1124 = vmax.xlane.f32.xlu1 %v2825_v2  ;;  %v2833_v12 = vadd.f32 %v2643_v8, %v954_v4 }
 0x1f8   :  { %v1999_v9 = vpop.f32.mrf.mxu1 }
 0x1f9   :  { %1118 = vmax.xlane.f32.xlu0 %v2829_v6  ;;  %v2837_v19 = vadd.f32 %v1999_v9, %v2643_v8 }
 0x1fa   :  { %v967_v16 = vpop.f32.mrf.mxu1 }
 0x1fb   :  { %1120 = vmax.xlane.f32.xlu1 %v2833_v12  ;;  %v2845_v35 = vadd.f32 %v2643_v8, %v967_v16 }
 0x1fc   :  { %v2000_v23 = vpop.f32.mrf.mxu1 }
 0x1fd   :  { %v2841_v27 = vadd.f32 %v2000_v23, %v2643_v8  ;;  %1130 = vmax.xlane.f32.xlu0 %v2837_v19 }
 0x1fe   :  { %v970_v31 = vpop.f32.mrf.mxu1 }
 0x1ff   :  { %1132 = vmax.xlane.f32.xlu1 %v2841_v27  ;;  %v2849_v44 = vadd.f32 %v2643_v8, %v970_v31 }
 0x200   :  { %v2003_v40 = vpop.f32.mrf.mxu1 }
 0x201   :  { %1126 = vmax.xlane.f32.xlu0 %v2845_v35  ;;  %v2853_v52 = vadd.f32 %v2003_v40, %v2643_v8 }
 0x202   :  { %v983_v48 = vpop.f32.mrf.mxu1 }
 0x203   :  { %1128 = vmax.xlane.f32.xlu1 %v2849_v44  ;;  %v2861_v4 = vadd.f32 %v2643_v8, %v983_v48 }
 0x204   :  { %v2004_v56 = vpop.f32.mrf.mxu1 }
 0x205   :  { %v2857_v60 = vadd.f32 %v2004_v56, %v2643_v8  ;;  %1138 = vmax.xlane.f32.xlu0 %v2853_v52  ;;  %3508 = vst [vmem:[#allocation3_spill] sm:$0xff] %v2861_v4 }
 0x206   :  { %v986_v0 = vpop.f32.mrf.mxu1 }
 0x207   :  { %3507 = vst [vmem:[#allocation2_spill] sm:$0xff] %v2857_v60  ;;  %1140 = vmax.xlane.f32.xlu1 %v2857_v60  ;;  %v2865_v16 = vadd.f32 %v2643_v8, %v986_v0 }
 0x208   :  { %v2007_v9 = vpop.f32.mrf.mxu1 }
 0x209   :  { %3509 = vst [vmem:[#allocation4_spill] sm:$0xff] %v2865_v16  ;;  %1134 = vmax.xlane.f32.xlu0 %v2861_v4  ;;  %v2869_v31 = vadd.f32 %v2007_v9, %v2643_v8 }
 0x20a   :  { %v999_v23 = vpop.f32.mrf.mxu1 }
 0x20b   :  { %3510 = vst [vmem:[#allocation5_spill] sm:$0xff] %v2869_v31  ;;  %1136 = vmax.xlane.f32.xlu1 %v2865_v16  ;;  %v2877_v60 = vadd.f32 %v2643_v8, %v999_v23 }
 0x20c   :  { %v2008_v40 = vpop.f32.mrf.mxu1 }
 0x20d   :  { %v2873_v56 = vadd.f32 %v2008_v40, %v2643_v8  ;;  %1146 = vmax.xlane.f32.xlu0 %v2869_v31  ;;  %3512 = vst [vmem:[#allocation7_spill] sm:$0xff] %v2877_v60 }
 0x20e   :  { %v1002_v48 = vpop.f32.mrf.mxu1 }
 0x20f   :  { %3511 = vst [vmem:[#allocation6_spill] sm:$0xff] %v2873_v56  ;;  %1148 = vmax.xlane.f32.xlu1 %v2873_v56  ;;  %v2881_v4 = vadd.f32 %v2643_v8, %v1002_v48 }
 0x210   :  { %v2011_v0 = vpop.f32.mrf.mxu1 }
 0x211   :  { %3513 = vst [vmem:[#allocation8_spill] sm:$0xff] %v2881_v4  ;;  %1142 = vmax.xlane.f32.xlu0 %v2877_v60  ;;  %v2885_v16 = vadd.f32 %v2011_v0, %v2643_v8 }
 0x212   :  { %v1015_v9 = vpop.f32.mrf.mxu1 }
 0x213   :  { %3514 = vst [vmem:[#allocation9_spill] sm:$0xff] %v2885_v16  ;;  %1144 = vmax.xlane.f32.xlu1 %v2881_v4  ;;  %v2893_v56 = vadd.f32 %v2643_v8, %v1015_v9 }
 0x214   :  { %v2012_v40 = vpop.f32.mrf.mxu1 }
 0x215   :  { %v2889_v31 = vadd.f32 %v2012_v40, %v2643_v8  ;;  %1154 = vmax.xlane.f32.xlu0 %v2885_v16  ;;  %3516 = vst [vmem:[#allocation11_spill] sm:$0xff] %v2893_v56 }
 0x216   :  { %v1018_v23 = vpop.f32.mrf.mxu1 }
 0x217   :  { %3515 = vst [vmem:[#allocation10_spill] sm:$0xff] %v2889_v31  ;;  %1156 = vmax.xlane.f32.xlu1 %v2889_v31  ;;  %v2897_v48 = vadd.f32 %v2643_v8, %v1018_v23 }
 0x219   :  { %3517 = vst [vmem:[#allocation12_spill] sm:$0xff] %v2897_v48  ;;  %1150 = vmax.xlane.f32.xlu0 %v2893_v56 }
 0x21b   :  { %1152 = vmax.xlane.f32.xlu1 %v2897_v48 }
 0x224   :  { %v1035_v0 = vpop.xlane.xlu1 %1034 }
 0x225   :  { %v2902_v4 = vsub.f32 %v2646_v10, %v1035_v0 }
 0x226   :  { %v1031_v40 = vpop.xlane.xlu0 %1030 }
 0x227   :  { %v1226_v16 = vmul.f32 1.442695, %v2902_v4  ;;  %v2906_v60 = vsub.f32 %v2649_v11, %v1031_v40 }
 0x228   :  { %v1037_v9 = vpop.xlane.xlu1 %1036 }
 0x229   :  { %2017 = vpow2.f32 %v1226_v16  ;;  %v1222_v31 = vmul.f32 1.442695, %v2906_v60  ;;  %v2910_v8 = vsub.f32 %v2653_v13, %v1037_v9 }
 0x22a   :  { %v1033_v23 = vpop.xlane.xlu0 %1032 }
 0x22b   :  { %v1228_v48 = vmul.f32 1.442695, %v2910_v8  ;;  %v2914_v56 = vsub.f32 %v2657_v15, %v1033_v23  ;;  %2019 = vpow2.f32 %v1222_v31 }
 0x22d   :  { %2021 = vpow2.f32 %v1228_v48  ;;  %v1224_v10 = vmul.f32 1.442695, %v2914_v56 }
 0x22e   :  { %v1043_v0 = vpop.xlane.xlu0 %1042 }
 0x22f   :  { %v2918_v11 = vsub.f32 %v2662_v18, %v1043_v0  ;;  %2023 = vpow2.f32 %v1224_v10 }
 0x230   :  { %v1045_v16 = vpop.xlane.xlu1 %1044 }
 0x231   :  { %v1234_v40 = vmul.f32 1.442695, %v2918_v11  ;;  %v2922_v13 = vsub.f32 %v2665_v20, %v1045_v16 }
 0x232   :  { %v1039_v9 = vpop.xlane.xlu0 %1038 }
 0x233   :  { %3518 = vst [vmem:[#allocation13_spill] sm:$0xff] %v2922_v13  ;;  %2025 = vpow2.f32 %v1234_v40  ;;  %v1236_v15 = vmul.f32 1.442695, %v2922_v13  ;;  %v2926_v31 = vsub.f32 %v2669_v22, %v1039_v9 }
 0x234   :  { %v1041_v48 = vpop.xlane.xlu1 %1040 }
 0x235   :  { %2027 = vpow2.f32 %v1236_v15  ;;  %v1230_v23 = vmul.f32 1.442695, %v2926_v31  ;;  %v2930_v18 = vsub.f32 %v2673_v24, %v1041_v48 }
 0x236   :  { %v2018_v10 = vpop.eup %2017  ;;  %v1051_v0 = vpop.xlane.xlu0 %1050 }
 0x237   :  { %2029 = vpow2.f32 %v1230_v23  ;;  %v1232_v20 = vmul.f32 1.442695, %v2930_v18  ;;  %v2934_v16 = vsub.f32 %v2677_v26, %v1051_v0  ;;  %1354 = vadd.xlane.f32.xlu0 %v2018_v10 }
 0x238   :  { %v1053_v40 = vpop.xlane.xlu1 %1052  ;;  %v2020_v13 = vpop.eup %2019 }
 0x239   :  { %2031 = vpow2.f32 %v1232_v20  ;;  %v1242_v22 = vmul.f32 1.442695, %v2934_v16  ;;  %v2938_v9 = vsub.f32 %v2681_v28, %v1053_v40 }
 0x23a   :  { %v2022_v15 = vpop.eup %2021  ;;  %v1047_v24 = vpop.xlane.xlu0 %1046 }
 0x23b   :  { %2033 = vpow2.f32 %v1242_v22  ;;  %v1244_v48 = vmul.f32 1.442695, %v2938_v9  ;;  %v2942_v23 = vsub.f32 %v2685_v30, %v1047_v24  ;;  %1356 = vadd.xlane.f32.xlu1 %v2022_v15  ;;  %1350 = vadd.xlane.f32.xlu0 %v2020_v13 }
 0x23c   :  { %v1049_v26 = vpop.xlane.xlu1 %1048  ;;  %v2024_v20 = vpop.eup %2023 }
 0x23d   :  { %2035 = vpow2.f32 %v1244_v48  ;;  %v1238_v10 = vmul.f32 1.442695, %v2942_v23  ;;  %v2946_v0 = vsub.f32 %v2689_v32, %v1049_v26 }
 0x23e   :  { %v1059_v28 = vpop.xlane.xlu0 %1058 }
 0x23f   :  { %2037 = vpow2.f32 %v1238_v10  ;;  %v1240_v40 = vmul.f32 1.442695, %v2946_v0  ;;  %v2950_v22 = vsub.f32 %v2693_v34, %v1059_v28  ;;  %1352 = vadd.xlane.f32.xlu1 %v2024_v20 }
 0x240   :  { %v2026_v30 = vpop.eup %2025  ;;  %v1061_v24 = vpop.xlane.xlu1 %1060 }
 0x241   :  { %2039 = vpow2.f32 %v1240_v40  ;;  %v1250_v13 = vmul.f32 1.442695, %v2950_v22  ;;  %v2954_v15 = vsub.f32 %v2697_v36, %v1061_v24  ;;  %1362 = vadd.xlane.f32.xlu0 %v2026_v30 }
 0x242   :  { %v2028_v32 = vpop.eup %2027  ;;  %v1055_v48 = vpop.xlane.xlu0 %1054 }
 0x243   :  { %2041 = vpow2.f32 %v1250_v13  ;;  %v1252_v26 = vmul.f32 1.442695, %v2954_v15  ;;  %v2958_v10 = vsub.f32 %v2701_v39, %v1055_v48  ;;  %1364 = vadd.xlane.f32.xlu1 %v2028_v32 }
 0x244   :  { %v2030_v34 = vpop.eup %2029  ;;  %v1057_v20 = vpop.xlane.xlu1 %1056 }
 0x245   :  { %2043 = vpow2.f32 %v1252_v26  ;;  %v1246_v28 = vmul.f32 1.442695, %v2958_v10  ;;  %v2962_v40 = vsub.f32 %v2705_v41, %v1057_v20  ;;  %1358 = vadd.xlane.f32.xlu0 %v2030_v34 }
 0x246   :  { %v2032_v36 = vpop.eup %2031  ;;  %v1067_v30 = vpop.xlane.xlu0 %1066 }
 0x247   :  { %2045 = vpow2.f32 %v1246_v28  ;;  %v1248_v24 = vmul.f32 1.442695, %v2962_v40  ;;  %v2966_v13 = vsub.f32 %v2709_v43, %v1067_v30  ;;  %1360 = vadd.xlane.f32.xlu1 %v2032_v36 }
 0x248   :  { %v2034_v39 = vpop.eup %2033  ;;  %v1069_v32 = vpop.xlane.xlu1 %1068 }
 0x249   :  { %2047 = vpow2.f32 %v1248_v24  ;;  %v1258_v48 = vmul.f32 1.442695, %v2966_v13  ;;  %v2970_v26 = vsub.f32 %v2713_v45, %v1069_v32  ;;  %1370 = vadd.xlane.f32.xlu0 %v2034_v39 }
 0x24a   :  { %v2036_v41 = vpop.eup %2035  ;;  %v1063_v34 = vpop.xlane.xlu0 %1062 }
 0x24b   :  { %2049 = vpow2.f32 %v1258_v48  ;;  %v1260_v20 = vmul.f32 1.442695, %v2970_v26  ;;  %v2974_v28 = vsub.f32 %v2717_v47, %v1063_v34  ;;  %1372 = vadd.xlane.f32.xlu1 %v2036_v41 }
 0x24c   :  { %v2038_v43 = vpop.eup %2037  ;;  %v1065_v36 = vpop.xlane.xlu1 %1064 }
 0x24d   :  { %2051 = vpow2.f32 %v1260_v20  ;;  %v1254_v30 = vmul.f32 1.442695, %v2974_v28  ;;  %v2978_v24 = vsub.f32 %v2721_v49, %v1065_v36  ;;  %1366 = vadd.xlane.f32.xlu0 %v2038_v43 }
 0x24e   :  { %v2040_v45 = vpop.eup %2039  ;;  %v1075_v39 = vpop.xlane.xlu0 %1074 }
 0x24f   :  { %2053 = vpow2.f32 %v1254_v30  ;;  %v1256_v32 = vmul.f32 1.442695, %v2978_v24  ;;  %v2982_v48 = vsub.f32 %v2725_v51, %v1075_v39  ;;  %1368 = vadd.xlane.f32.xlu1 %v2040_v45 }
 0x250   :  { %v2042_v47 = vpop.eup %2041  ;;  %v1077_v41 = vpop.xlane.xlu1 %1076 }
 0x251   :  { %2055 = vpow2.f32 %v1256_v32  ;;  %v1266_v34 = vmul.f32 1.442695, %v2982_v48  ;;  %v2986_v20 = vsub.f32 %v2729_v53, %v1077_v41  ;;  %1378 = vadd.xlane.f32.xlu0 %v2042_v47 }
 0x252   :  { %v2044_v49 = vpop.eup %2043  ;;  %v1071_v43 = vpop.xlane.xlu0 %1070 }
 0x253   :  { %2057 = vpow2.f32 %v1266_v34  ;;  %v1268_v36 = vmul.f32 1.442695, %v2986_v20  ;;  %v2990_v30 = vsub.f32 %v2733_v55, %v1071_v43  ;;  %1380 = vadd.xlane.f32.xlu1 %v2044_v49 }
 0x254   :  { %v2046_v51 = vpop.eup %2045  ;;  %v1073_v45 = vpop.xlane.xlu1 %1072 }
 0x255   :  { %2059 = vpow2.f32 %v1268_v36  ;;  %v1262_v39 = vmul.f32 1.442695, %v2990_v30  ;;  %v2994_v32 = vsub.f32 %v2737_v57, %v1073_v45  ;;  %1374 = vadd.xlane.f32.xlu0 %v2046_v51 }
 0x256   :  { %v2048_v53 = vpop.eup %2047  ;;  %v1083_v47 = vpop.xlane.xlu0 %1082 }
 0x257   :  { %2061 = vpow2.f32 %v1262_v39  ;;  %v1264_v41 = vmul.f32 1.442695, %v2994_v32  ;;  %v2998_v34 = vsub.f32 %v2741_v59, %v1083_v47  ;;  %1376 = vadd.xlane.f32.xlu1 %v2048_v53 }
 0x258   :  { %v2050_v55 = vpop.eup %2049  ;;  %v1085_v49 = vpop.xlane.xlu1 %1084 }
 0x259   :  { %2063 = vpow2.f32 %v1264_v41  ;;  %v1274_v43 = vmul.f32 1.442695, %v2998_v34  ;;  %v3002_v36 = vsub.f32 %v2745_v61, %v1085_v49  ;;  %1386 = vadd.xlane.f32.xlu0 %v2050_v55 }
 0x25a   :  { %v2052_v57 = vpop.eup %2051  ;;  %v1079_v51 = vpop.xlane.xlu0 %1078 }
 0x25b   :  { %2065 = vpow2.f32 %v1274_v43  ;;  %v1276_v45 = vmul.f32 1.442695, %v3002_v36  ;;  %v3006_v39 = vsub.f32 %v2749_v63, %v1079_v51  ;;  %1388 = vadd.xlane.f32.xlu1 %v2052_v57 }
 0x25c   :  { %v2054_v59 = vpop.eup %2053  ;;  %v1081_v53 = vpop.xlane.xlu1 %1080 }
 0x25d   :  { %2067 = vpow2.f32 %v1276_v45  ;;  %v1270_v47 = vmul.f32 1.442695, %v3006_v39  ;;  %v3010_v41 = vsub.f32 %v2753_v1, %v1081_v53  ;;  %1382 = vadd.xlane.f32.xlu0 %v2054_v59 }
 0x25e   :  { %v2056_v61 = vpop.eup %2055  ;;  %v1091_v55 = vpop.xlane.xlu0 %1090 }
 0x25f   :  { %2069 = vpow2.f32 %v1270_v47  ;;  %v1272_v49 = vmul.f32 1.442695, %v3010_v41  ;;  %v3014_v43 = vsub.f32 %v2757_v3, %v1091_v55  ;;  %1384 = vadd.xlane.f32.xlu1 %v2056_v61 }
 0x260   :  { %v2058_v63 = vpop.eup %2057  ;;  %v1093_v57 = vpop.xlane.xlu1 %1092 }
 0x261   :  { %2071 = vpow2.f32 %v1272_v49  ;;  %v1282_v51 = vmul.f32 1.442695, %v3014_v43  ;;  %v3018_v45 = vsub.f32 %v2761_v5, %v1093_v57  ;;  %1394 = vadd.xlane.f32.xlu0 %v2058_v63 }
 0x262   :  { %v2060_v1 = vpop.eup %2059  ;;  %v1087_v59 = vpop.xlane.xlu0 %1086 }
 0x263   :  { %2073 = vpow2.f32 %v1282_v51  ;;  %v1284_v53 = vmul.f32 1.442695, %v3018_v45  ;;  %v3022_v47 = vsub.f32 %v2765_v7, %v1087_v59  ;;  %1396 = vadd.xlane.f32.xlu1 %v2060_v1 }
 0x264   :  { %v2062_v3 = vpop.eup %2061  ;;  %v1089_v61 = vpop.xlane.xlu1 %1088 }
 0x265   :  { %2075 = vpow2.f32 %v1284_v53  ;;  %v1278_v55 = vmul.f32 1.442695, %v3022_v47  ;;  %v3026_v49 = vsub.f32 %v2769_v38, %v1089_v61  ;;  %1390 = vadd.xlane.f32.xlu0 %v2062_v3 }
 0x266   :  { %v2064_v5 = vpop.eup %2063  ;;  %v1099_v63 = vpop.xlane.xlu0 %1098 }
 0x267   :  { %2077 = vpow2.f32 %v1278_v55  ;;  %v1280_v57 = vmul.f32 1.442695, %v3026_v49  ;;  %v3030_v51 = vsub.f32 %v2773_v14, %v1099_v63  ;;  %1392 = vadd.xlane.f32.xlu1 %v2064_v5 }
 0x268   :  { %v2066_v7 = vpop.eup %2065  ;;  %v1101_v1 = vpop.xlane.xlu1 %1100 }
 0x269   :  { %2079 = vpow2.f32 %v1280_v57  ;;  %v1290_v59 = vmul.f32 1.442695, %v3030_v51  ;;  %v3034_v53 = vsub.f32 %v2777_v17, %v1101_v1  ;;  %1402 = vadd.xlane.f32.xlu0 %v2066_v7 }
 0x26a   :  { %v2068_v38 = vpop.eup %2067  ;;  %v1095_v3 = vpop.xlane.xlu0 %1094 }
 0x26b   :  { %2081 = vpow2.f32 %v1290_v59  ;;  %v1292_v61 = vmul.f32 1.442695, %v3034_v53  ;;  %v3038_v55 = vsub.f32 %v2781_v21, %v1095_v3  ;;  %1404 = vadd.xlane.f32.xlu1 %v2068_v38 }
 0x26c   :  { %v2070_v14 = vpop.eup %2069  ;;  %v1097_v5 = vpop.xlane.xlu1 %1096 }
 0x26d   :  { %2083 = vpow2.f32 %v1292_v61  ;;  %v1286_v63 = vmul.f32 1.442695, %v3038_v55  ;;  %v3042_v57 = vsub.f32 %v2785_v25, %v1097_v5  ;;  %1398 = vadd.xlane.f32.xlu0 %v2070_v14 }
 0x26e   :  { %v2072_v17 = vpop.eup %2071  ;;  %v1107_v7 = vpop.xlane.xlu0 %1106 }
 0x26f   :  { %2085 = vpow2.f32 %v1286_v63  ;;  %v1288_v1 = vmul.f32 1.442695, %v3042_v57  ;;  %v3046_v59 = vsub.f32 %v2789_v29, %v1107_v7  ;;  %1400 = vadd.xlane.f32.xlu1 %v2072_v17 }
 0x270   :  { %v2074_v21 = vpop.eup %2073  ;;  %v1109_v38 = vpop.xlane.xlu1 %1108 }
 0x271   :  { %2087 = vpow2.f32 %v1288_v1  ;;  %v1298_v3 = vmul.f32 1.442695, %v3046_v59  ;;  %v3050_v61 = vsub.f32 %v2793_v33, %v1109_v38  ;;  %1410 = vadd.xlane.f32.xlu0 %v2074_v21 }
 0x272   :  { %v2076_v25 = vpop.eup %2075  ;;  %v1103_v14 = vpop.xlane.xlu0 %1102 }
 0x273   :  { %2089 = vpow2.f32 %v1298_v3  ;;  %v1300_v5 = vmul.f32 1.442695, %v3050_v61  ;;  %v3054_v63 = vsub.f32 %v2797_v37, %v1103_v14  ;;  %1412 = vadd.xlane.f32.xlu1 %v2076_v25 }
 0x274   :  { %v2078_v29 = vpop.eup %2077  ;;  %v1105_v17 = vpop.xlane.xlu1 %1104 }
 0x275   :  { %2091 = vpow2.f32 %v1300_v5  ;;  %v1294_v7 = vmul.f32 1.442695, %v3054_v63  ;;  %v3058_v1 = vsub.f32 %v2801_v42, %v1105_v17  ;;  %1406 = vadd.xlane.f32.xlu0 %v2078_v29 }
 0x276   :  { %v2080_v33 = vpop.eup %2079  ;;  %v1115_v21 = vpop.xlane.xlu0 %1114 }
 0x277   :  { %2093 = vpow2.f32 %v1294_v7  ;;  %v1296_v38 = vmul.f32 1.442695, %v3058_v1  ;;  %v3062_v3 = vsub.f32 %v2805_v46, %v1115_v21  ;;  %1408 = vadd.xlane.f32.xlu1 %v2080_v33 }
 0x278   :  { %v2082_v37 = vpop.eup %2081  ;;  %v1117_v25 = vpop.xlane.xlu1 %1116 }
 0x279   :  { %2095 = vpow2.f32 %v1296_v38  ;;  %v1306_v14 = vmul.f32 1.442695, %v3062_v3  ;;  %v3066_v5 = vsub.f32 %v2809_v50, %v1117_v25  ;;  %1418 = vadd.xlane.f32.xlu0 %v2082_v37 }
 0x27a   :  { %v2084_v42 = vpop.eup %2083  ;;  %v1111_v29 = vpop.xlane.xlu0 %1110 }
 0x27b   :  { %2097 = vpow2.f32 %v1306_v14  ;;  %v1308_v17 = vmul.f32 1.442695, %v3066_v5  ;;  %v3070_v7 = vsub.f32 %v2813_v54, %v1111_v29  ;;  %1420 = vadd.xlane.f32.xlu1 %v2084_v42 }
 0x27c   :  { %v2086_v46 = vpop.eup %2085  ;;  %v1113_v33 = vpop.xlane.xlu1 %1112 }
 0x27d   :  { %2099 = vpow2.f32 %v1308_v17  ;;  %v1302_v21 = vmul.f32 1.442695, %v3070_v7  ;;  %v3074_v38 = vsub.f32 %v2817_v58, %v1113_v33  ;;  %1414 = vadd.xlane.f32.xlu0 %v2086_v46 }
 0x27e   :  { %v2088_v50 = vpop.eup %2087  ;;  %v1123_v37 = vpop.xlane.xlu0 %1122 }
 0x27f   :  { %2101 = vpow2.f32 %v1302_v21  ;;  %v1304_v25 = vmul.f32 1.442695, %v3074_v38  ;;  %v3078_v14 = vsub.f32 %v2821_v62, %v1123_v37  ;;  %1416 = vadd.xlane.f32.xlu1 %v2088_v50 }
 0x280   :  { %v2090_v54 = vpop.eup %2089  ;;  %v1125_v42 = vpop.xlane.xlu1 %1124 }
 0x281   :  { %2103 = vpow2.f32 %v1304_v25  ;;  %v1314_v29 = vmul.f32 1.442695, %v3078_v14  ;;  %v3082_v17 = vsub.f32 %v2825_v2, %v1125_v42  ;;  %1426 = vadd.xlane.f32.xlu0 %v2090_v54 }
 0x282   :  { %v2092_v58 = vpop.eup %2091  ;;  %v1119_v46 = vpop.xlane.xlu0 %1118 }
 0x283   :  { %2105 = vpow2.f32 %v1314_v29  ;;  %v1316_v33 = vmul.f32 1.442695, %v3082_v17  ;;  %v3086_v21 = vsub.f32 %v2829_v6, %v1119_v46  ;;  %1428 = vadd.xlane.f32.xlu1 %v2092_v58 }
 0x284   :  { %v2094_v62 = vpop.eup %2093  ;;  %v1121_v50 = vpop.xlane.xlu1 %1120 }
 0x285   :  { %2107 = vpow2.f32 %v1316_v33  ;;  %v1310_v37 = vmul.f32 1.442695, %v3086_v21  ;;  %v3090_v25 = vsub.f32 %v2833_v12, %v1121_v50  ;;  %1422 = vadd.xlane.f32.xlu0 %v2094_v62 }
 0x286   :  { %v2096_v2 = vpop.eup %2095  ;;  %v1131_v54 = vpop.xlane.xlu0 %1130 }
 0x287   :  { %2109 = vpow2.f32 %v1310_v37  ;;  %v1312_v42 = vmul.f32 1.442695, %v3090_v25  ;;  %v3094_v29 = vsub.f32 %v2837_v19, %v1131_v54  ;;  %1424 = vadd.xlane.f32.xlu1 %v2096_v2 }
 0x288   :  { %v2098_v6 = vpop.eup %2097  ;;  %v1133_v58 = vpop.xlane.xlu1 %1132 }
 0x289   :  { %3519 = vst [vmem:[#allocation14_spill] sm:$0xff] %v3094_v29  ;;  %2111 = vpow2.f32 %v1312_v42  ;;  %v1322_v46 = vmul.f32 1.442695, %v3094_v29  ;;  %v3098_v33 = vsub.f32 %v2841_v27, %v1133_v58  ;;  %1434 = vadd.xlane.f32.xlu0 %v2098_v6 }
 0x28a   :  { %v2100_v12 = vpop.eup %2099  ;;  %v1127_v62 = vpop.xlane.xlu0 %1126 }
 0x28b   :  { %3520 = vst [vmem:[#allocation15_spill] sm:$0xff] %v3098_v33  ;;  %2113 = vpow2.f32 %v1322_v46  ;;  %v1324_v50 = vmul.f32 1.442695, %v3098_v33  ;;  %v3102_v37 = vsub.f32 %v2845_v35, %v1127_v62  ;;  %1436 = vadd.xlane.f32.xlu1 %v2100_v12 }
 0x28c   :  { %v2102_v19 = vpop.eup %2101  ;;  %v1129_v2 = vpop.xlane.xlu1 %1128 }
 0x28d   :  { %3521 = vst [vmem:[#allocation16_spill] sm:$0xff] %v3102_v37  ;;  %2115 = vpow2.f32 %v1324_v50  ;;  %v1318_v54 = vmul.f32 1.442695, %v3102_v37  ;;  %v3106_v42 = vsub.f32 %v2849_v44, %v1129_v2  ;;  %1430 = vadd.xlane.f32.xlu0 %v2102_v19  ;;  %v3524_v50 = vld [vmem:[#allocation2_spill] sm:$0xff] }
 0x28e   :  { %v2104_v27 = vpop.eup %2103  ;;  %v1139_v6 = vpop.xlane.xlu0 %1138 }
 0x28f   :  { %3522 = vst [vmem:[#allocation17_spill] sm:$0xff] %v3106_v42  ;;  %2117 = vpow2.f32 %v1318_v54  ;;  %v1320_v58 = vmul.f32 1.442695, %v3106_v42  ;;  %v3110_v46 = vsub.f32 %v2853_v52, %v1139_v6  ;;  %1432 = vadd.xlane.f32.xlu1 %v2104_v27  ;;  %v3526_v54 = vld [vmem:[#allocation3_spill] sm:$0xff] }
 0x290   :  { %v2106_v35 = vpop.eup %2105  ;;  %v1141_v12 = vpop.xlane.xlu1 %1140 }
 0x291   :  { %3523 = vst [vmem:[#allocation18_spill] sm:$0xff] %v3110_v46  ;;  %2119 = vpow2.f32 %v1320_v58  ;;  %v1330_v62 = vmul.f32 1.442695, %v3110_v46  ;;  %v3114_v37 = vsub.f32 %v3524_v50, %v1141_v12  ;;  %1442 = vadd.xlane.f32.xlu0 %v2106_v35  ;;  %v3528_v58 = vld [vmem:[#allocation4_spill] sm:$0xff]  ;;  %v3530_v50 = vld [vmem:[#allocation5_spill] sm:$0xff] }
 0x292   :  { %v2108_v44 = vpop.eup %2107  ;;  %v1135_v19 = vpop.xlane.xlu0 %1134 }
 0x293   :  { %3525 = vst [vmem:[#allocation2_spill] sm:$0xff] %v3114_v37  ;;  %2121 = vpow2.f32 %v1330_v62  ;;  %v1332_v2 = vmul.f32 1.442695, %v3114_v37  ;;  %v3118_v42 = vsub.f32 %v3526_v54, %v1135_v19  ;;  %1444 = vadd.xlane.f32.xlu1 %v2108_v44  ;;  %v3532_v54 = vld [vmem:[#allocation6_spill] sm:$0xff] }
 0x294   :  { %v2110_v52 = vpop.eup %2109  ;;  %v1137_v27 = vpop.xlane.xlu1 %1136 }
 0x295   :  { %3527 = vst [vmem:[#allocation3_spill] sm:$0xff] %v3118_v42  ;;  %2123 = vpow2.f32 %v1332_v2  ;;  %v1326_v6 = vmul.f32 1.442695, %v3118_v42  ;;  %v3122_v46 = vsub.f32 %v3528_v58, %v1137_v27  ;;  %1438 = vadd.xlane.f32.xlu0 %v2110_v52  ;;  %v3534_v58 = vld [vmem:[#allocation7_spill] sm:$0xff] }
 0x296   :  { %v2112_v12 = vpop.eup %2111  ;;  %v1147_v35 = vpop.xlane.xlu0 %1146 }
 0x297   :  { %3529 = vst [vmem:[#allocation4_spill] sm:$0xff] %v3122_v46  ;;  %2125 = vpow2.f32 %v1326_v6  ;;  %v1328_v62 = vmul.f32 1.442695, %v3122_v46  ;;  %v3126_v37 = vsub.f32 %v3530_v50, %v1147_v35  ;;  %1440 = vadd.xlane.f32.xlu1 %v2112_v12  ;;  %v3536_v50 = vld [vmem:[#allocation8_spill] sm:$0xff] }
 0x298   :  { %v2114_v19 = vpop.eup %2113  ;;  %v1149_v44 = vpop.xlane.xlu1 %1148 }
 0x299   :  { %3531 = vst [vmem:[#allocation5_spill] sm:$0xff] %v3126_v37  ;;  %2127 = vpow2.f32 %v1328_v62  ;;  %v1338_v2 = vmul.f32 1.442695, %v3126_v37  ;;  %v3130_v42 = vsub.f32 %v3532_v54, %v1149_v44  ;;  %1450 = vadd.xlane.f32.xlu0 %v2114_v19 }
 0x29a   :  { %v2116_v27 = vpop.eup %2115  ;;  %v1143_v52 = vpop.xlane.xlu0 %1142 }
 0x29b   :  { %3533 = vst [vmem:[#allocation6_spill] sm:$0xff] %v3130_v42  ;;  %2129 = vpow2.f32 %v1338_v2  ;;  %v1340_v6 = vmul.f32 1.442695, %v3130_v42  ;;  %v3134_v46 = vsub.f32 %v3534_v58, %v1143_v52  ;;  %1452 = vadd.xlane.f32.xlu1 %v2116_v27  ;;  %v3538_v58 = vld [vmem:[#allocation9_spill] sm:$0xff] }
 0x29c   :  { %v2118_v35 = vpop.eup %2117  ;;  %v1145_v12 = vpop.xlane.xlu1 %1144 }
 0x29d   :  { %3535 = vst [vmem:[#allocation7_spill] sm:$0xff] %v3134_v46  ;;  %2131 = vpow2.f32 %v1340_v6  ;;  %v1334_v62 = vmul.f32 1.442695, %v3134_v46  ;;  %v3138_v37 = vsub.f32 %v3536_v50, %v1145_v12  ;;  %1446 = vadd.xlane.f32.xlu0 %v2118_v35  ;;  %v3539_v46 = vld [vmem:[#allocation11_spill] sm:$0xff]  ;;  %v3540_v50 = vld [vmem:[#allocation10_spill] sm:$0xff] }
 0x29e   :  { %v2120_v44 = vpop.eup %2119  ;;  %v1155_v19 = vpop.xlane.xlu0 %1154 }
 0x29f   :  { %3537 = vst [vmem:[#allocation8_spill] sm:$0xff] %v3138_v37  ;;  %2133 = vpow2.f32 %v1334_v62  ;;  %v1336_v2 = vmul.f32 1.442695, %v3138_v37  ;;  %1448 = vadd.xlane.f32.xlu1 %v2120_v44  ;;  %v3142_v6 = vsub.f32 %v3538_v58, %v1155_v19  ;;  %v3541_v37 = vld [vmem:[#allocation12_spill] sm:$0xff] }
 0x2a0   :  { %v2122_v54 = vpop.eup %2121  ;;  %v1157_v42 = vpop.xlane.xlu1 %1156 }
 0x2a1   :  { %2135 = vpow2.f32 %v1336_v2  ;;  %1458 = vadd.xlane.f32.xlu0 %v2122_v54  ;;  %v3148_v62 = vsub.f32 %v3540_v50, %v1157_v42  ;;  %v1346_v54 = vmul.f32 1.442695, %v3142_v6 }
 0x2a2   :  { %v2124_v27 = vpop.eup %2123  ;;  %v1151_v52 = vpop.xlane.xlu0 %1150 }
 0x2a3   :  { %v3145_v33 = vsub.f32 %v3539_v46, %v1151_v52  ;;  %1460 = vadd.xlane.f32.xlu1 %v2124_v27  ;;  %v1348_v27 = vmul.f32 1.442695, %v3148_v62 }
 0x2a4   :  { %v2126_v35 = vpop.eup %2125  ;;  %v1153_v12 = vpop.xlane.xlu1 %1152 }
 0x2a5   :  { %v1342_v44 = vmul.f32 1.442695, %v3145_v33  ;;  %v3152_v29 = vsub.f32 %v3541_v37, %v1153_v12  ;;  %1454 = vadd.xlane.f32.xlu0 %v2126_v35 }
 0x2a6   :  { %v2128_v2 = vpop.eup %2127 }
 0x2a7   :  { %2137 = vpow2.f32 %v1342_v44  ;;  %v1344_v19 = vmul.f32 1.442695, %v3152_v29  ;;  %1456 = vadd.xlane.f32.xlu1 %v2128_v2 }
 0x2a8   :  { %v2130_v46 = vpop.eup %2129 }
 0x2a9   :  { %2139 = vpow2.f32 %v1344_v19  ;;  %1466 = vadd.xlane.f32.xlu0 %v2130_v46 }
 0x2aa   :  { %v2132_v42 = vpop.eup %2131  ;;  %2141 = vpow2.f32 %v1346_v54 }
 0x2ab   :  { %1468 = vadd.xlane.f32.xlu1 %v2132_v42  ;;  %2143 = vpow2.f32 %v1348_v27 }
 0x2ac   :  { %v2134_v52 = vpop.eup %2133 }
 0x2ad   :  { %1462 = vadd.xlane.f32.xlu0 %v2134_v52 }
 0x2ae   :  { %v2136_v37 = vpop.eup %2135 }
 0x2af   :  { %1464 = vadd.xlane.f32.xlu1 %v2136_v37 }
 0x2b4   :  { %v2138_v58 = vpop.eup %2137 }
 0x2b5   :  { %1470 = vadd.xlane.f32.xlu0 %v2138_v58 }
 0x2b6   :  { %v2140_v35 = vpop.eup %2139 }
 0x2b7   :  { %1472 = vadd.xlane.f32.xlu1 %v2140_v35  ;;  %v2142_v12 = vpop.eup %2141 }
 0x2b8   :  { %v2144_v50 = vpop.eup %2143 }
 0x2b9   :  { %1474 = vadd.xlane.f32.xlu0 %v2142_v12 }
 0x2bb   :  { %1476 = vadd.xlane.f32.xlu1 %v2144_v50 }
 0x2c0   :  { %v1355_v44 = vpop.xlane.xlu0 %1354 }
 0x2c1   :  { %2145 = vlog2.f32 %v1355_v44 }
 0x2c4   :  { %v1357_v2 = vpop.xlane.xlu1 %1356  ;;  %v1351_v19 = vpop.xlane.xlu0 %1350 }
 0x2c5   :  { %2147 = vlog2.f32 %v1357_v2 }
 0x2c6   :  { %2149 = vlog2.f32 %v1351_v19 }
 0x2c8   :  { %v1353_v54 = vpop.xlane.xlu1 %1352 }
 0x2c9   :  { %2151 = vlog2.f32 %v1353_v54 }
 0x2ca   :  { %v1363_v46 = vpop.xlane.xlu0 %1362 }
 0x2cb   :  { %2153 = vlog2.f32 %v1363_v46 }
 0x2cc   :  { %v1365_v27 = vpop.xlane.xlu1 %1364 }
 0x2cd   :  { %2155 = vlog2.f32 %v1365_v27 }
 0x2ce   :  { %v2146_v42 = vpop.eup %2145  ;;  %v1359_v52 = vpop.xlane.xlu0 %1358 }
 0x2cf   :  { %v1483_v37 = vmul.f32 0.6931472, %v2146_v42  ;;  %2157 = vlog2.f32 %v1359_v52 }
 0x2d0   :  { %v1361_v58 = vpop.xlane.xlu1 %1360 }
 0x2d1   :  { %v1608_v35 = vsub.f32 %v2902_v4, %v1483_v37  ;;  %2159 = vlog2.f32 %v1361_v58 }
 0x2d2   :  { %v2148_v12 = vpop.eup %2147  ;;  %v1371_v50 = vpop.xlane.xlu0 %1370 }
 0x2d3   :  { %v2150_v44 = vpop.eup %2149  ;;  %1673 = vst.msk [vmem:[%s3482_s5 + $0x10] sm:$0xff] %vm1670_vm1, %v1608_v35  ;;  %v1485_v2 = vmul.f32 0.6931472, %v2148_v12  ;;  %2161 = vlog2.f32 %v1371_v50 }
 0x2d4   :  { %v1479_v19 = vmul.f32 0.6931472, %v2150_v44  ;;  %v1373_v54 = vpop.xlane.xlu1 %1372 }
 0x2d5   :  { %v1609_v46 = vsub.f32 %v2910_v8, %v1485_v2  ;;  %2163 = vlog2.f32 %v1373_v54 }
 0x2d6   :  { %v2152_v27 = vpop.eup %2151  ;;  %v1606_v42 = vsub.f32 %v2906_v60, %v1479_v19  ;;  %v1367_v4 = vpop.xlane.xlu0 %1366 }
 0x2d7   :  { %1674 = vst.msk [vmem:[%s3482_s5 + $0x18] sm:$0xff] %vm1670_vm1, %v1609_v46  ;;  %v1481_v52 = vmul.f32 0.6931472, %v2152_v27  ;;  %2165 = vlog2.f32 %v1367_v4 }
 0x2d8   :  { %v2154_v37 = vpop.eup %2153  ;;  %1671 = vst.msk [vmem:[%s3482_s5] sm:$0xff] %vm1670_vm1, %v1606_v42  ;;  %v1369_v58 = vpop.xlane.xlu1 %1368 }
 0x2d9   :  { %v1607_v8 = vsub.f32 %v2914_v56, %v1481_v52  ;;  %v1491_v35 = vmul.f32 0.6931472, %v2154_v37  ;;  %2167 = vlog2.f32 %v1369_v58  ;;  %v3542_v56 = vld [vmem:[#allocation13_spill] sm:$0xff] }
 0x2da   :  { %v2156_v60 = vpop.eup %2155  ;;  %v1379_v12 = vpop.xlane.xlu0 %1378 }
 0x2db   :  { %1672 = vst.msk [vmem:[%s3482_s5 + $0x8] sm:$0xff] %vm1670_vm1, %v1607_v8  ;;  %v1612_v50 = vsub.f32 %v2918_v11, %v1491_v35  ;;  %v1493_v44 = vmul.f32 0.6931472, %v2156_v60  ;;  %2169 = vlog2.f32 %v1379_v12 }
 0x2dc   :  { %v2158_v2 = vpop.eup %2157  ;;  %v1381_v19 = vpop.xlane.xlu1 %1380 }
 0x2dd   :  { %1677 = vst.msk [vmem:[%s3482_s5 + $0x30] sm:$0xff] %vm1670_vm1, %v1612_v50  ;;  %v1613_v54 = vsub.f32 %v3542_v56, %v1493_v44  ;;  %v1487_v46 = vmul.f32 0.6931472, %v2158_v2  ;;  %2171 = vlog2.f32 %v1381_v19 }
 0x2de   :  { %v2160_v27 = vpop.eup %2159  ;;  %v1375_v42 = vpop.xlane.xlu0 %1374 }
 0x2df   :  { %1678 = vst.msk [vmem:[%s3482_s5 + $0x38] sm:$0xff] %vm1670_vm1, %v1613_v54  ;;  %v1610_v11 = vsub.f32 %v2926_v31, %v1487_v46  ;;  %v1489_v4 = vmul.f32 0.6931472, %v2160_v27  ;;  %2173 = vlog2.f32 %v1375_v42 }
 0x2e0   :  { %v2162_v52 = vpop.eup %2161  ;;  %v1377_v37 = vpop.xlane.xlu1 %1376 }
 0x2e1   :  { %1675 = vst.msk [vmem:[%s3482_s5 + $0x20] sm:$0xff] %vm1670_vm1, %v1610_v11  ;;  %v1611_v58 = vsub.f32 %v2930_v18, %v1489_v4  ;;  %v1499_v8 = vmul.f32 0.6931472, %v2162_v52  ;;  %2175 = vlog2.f32 %v1377_v37 }
 0x2e2   :  { %v2164_v35 = vpop.eup %2163  ;;  %v1387_v60 = vpop.xlane.xlu0 %1386 }
 0x2e3   :  { %1676 = vst.msk [vmem:[%s3482_s5 + $0x28] sm:$0xff] %vm1670_vm1, %v1611_v58  ;;  %v1616_v31 = vsub.f32 %v2934_v16, %v1499_v8  ;;  %v1501_v12 = vmul.f32 0.6931472, %v2164_v35  ;;  %2177 = vlog2.f32 %v1387_v60 }
 0x2e4   :  { %v2166_v50 = vpop.eup %2165  ;;  %v1389_v44 = vpop.xlane.xlu1 %1388 }
 0x2e5   :  { %1681 = vst.msk [vmem:[%s3482_s5 + $0x50] sm:$0xff] %vm1670_vm1, %v1616_v31  ;;  %v1617_v18 = vsub.f32 %v2938_v9, %v1501_v12  ;;  %v1495_v2 = vmul.f32 0.6931472, %v2166_v50  ;;  %2179 = vlog2.f32 %v1389_v44 }
 0x2e6   :  { %v2168_v19 = vpop.eup %2167  ;;  %v1383_v56 = vpop.xlane.xlu0 %1382 }
 0x2e7   :  { %1682 = vst.msk [vmem:[%s3482_s5 + $0x58] sm:$0xff] %vm1670_vm1, %v1617_v18  ;;  %v1614_v16 = vsub.f32 %v2942_v23, %v1495_v2  ;;  %v1497_v54 = vmul.f32 0.6931472, %v2168_v19  ;;  %2181 = vlog2.f32 %v1383_v56 }
 0x2e8   :  { %v2170_v46 = vpop.eup %2169  ;;  %v1385_v27 = vpop.xlane.xlu1 %1384 }
 0x2e9   :  { %1679 = vst.msk [vmem:[%s3482_s5 + $0x40] sm:$0xff] %vm1670_vm1, %v1614_v16  ;;  %v1615_v9 = vsub.f32 %v2946_v0, %v1497_v54  ;;  %v1507_v42 = vmul.f32 0.6931472, %v2170_v46  ;;  %2183 = vlog2.f32 %v1385_v27 }
 0x2ea   :  { %v2172_v11 = vpop.eup %2171  ;;  %v1395_v4 = vpop.xlane.xlu0 %1394 }
 0x2eb   :  { %1680 = vst.msk [vmem:[%s3482_s5 + $0x48] sm:$0xff] %vm1670_vm1, %v1615_v9  ;;  %v1620_v23 = vsub.f32 %v2950_v22, %v1507_v42  ;;  %v1509_v52 = vmul.f32 0.6931472, %v2172_v11  ;;  %2185 = vlog2.f32 %v1395_v4 }
 0x2ec   :  { %v2174_v37 = vpop.eup %2173  ;;  %v1397_v58 = vpop.xlane.xlu1 %1396 }
 0x2ed   :  { %1685 = vst.msk [vmem:[%s3482_s5 + $0x70] sm:$0xff] %vm1670_vm1, %v1620_v23  ;;  %v1621_v0 = vsub.f32 %v2954_v15, %v1509_v52  ;;  %v1503_v8 = vmul.f32 0.6931472, %v2174_v37  ;;  %2187 = vlog2.f32 %v1397_v58 }
 0x2ee   :  { %v2176_v35 = vpop.eup %2175  ;;  %v1391_v60 = vpop.xlane.xlu0 %1390 }
 0x2ef   :  { %1686 = vst.msk [vmem:[%s3482_s5 + $0x78] sm:$0xff] %vm1670_vm1, %v1621_v0  ;;  %v1618_v22 = vsub.f32 %v2958_v10, %v1503_v8  ;;  %v1505_v31 = vmul.f32 0.6931472, %v2176_v35  ;;  %2189 = vlog2.f32 %v1391_v60 }
 0x2f0   :  { %v2178_v12 = vpop.eup %2177  ;;  %v1393_v50 = vpop.xlane.xlu1 %1392 }
 0x2f1   :  { %1683 = vst.msk [vmem:[%s3482_s5 + $0x60] sm:$0xff] %vm1670_vm1, %v1618_v22  ;;  %v1619_v15 = vsub.f32 %v2962_v40, %v1505_v31  ;;  %v1515_v44 = vmul.f32 0.6931472, %v2178_v12  ;;  %2191 = vlog2.f32 %v1393_v50 }
 0x2f2   :  { %v2180_v18 = vpop.eup %2179  ;;  %v1403_v2 = vpop.xlane.xlu0 %1402 }
 0x2f3   :  { %1684 = vst.msk [vmem:[%s3482_s5 + $0x68] sm:$0xff] %vm1670_vm1, %v1619_v15  ;;  %v1624_v10 = vsub.f32 %v2966_v13, %v1515_v44  ;;  %v1517_v19 = vmul.f32 0.6931472, %v2180_v18  ;;  %2193 = vlog2.f32 %v1403_v2 }
 0x2f4   :  { %v2182_v56 = vpop.eup %2181  ;;  %v1405_v16 = vpop.xlane.xlu1 %1404 }
 0x2f5   :  { %1689 = vst.msk [vmem:[%s3482_s5 + $0x90] sm:$0xff] %vm1670_vm1, %v1624_v10  ;;  %v1625_v40 = vsub.f32 %v2970_v26, %v1517_v19  ;;  %v1511_v54 = vmul.f32 0.6931472, %v2182_v56  ;;  %2195 = vlog2.f32 %v1405_v16 }
 0x2f6   :  { %v2184_v46 = vpop.eup %2183  ;;  %v1399_v27 = vpop.xlane.xlu0 %1398 }
 0x2f7   :  { %1690 = vst.msk [vmem:[%s3482_s5 + $0x98] sm:$0xff] %vm1670_vm1, %v1625_v40  ;;  %v1622_v13 = vsub.f32 %v2974_v28, %v1511_v54  ;;  %v1513_v9 = vmul.f32 0.6931472, %v2184_v46  ;;  %2197 = vlog2.f32 %v1399_v27 }
 0x2f8   :  { %v2186_v42 = vpop.eup %2185  ;;  %v1401_v11 = vpop.xlane.xlu1 %1400 }
 0x2f9   :  { %1687 = vst.msk [vmem:[%s3482_s5 + $0x80] sm:$0xff] %vm1670_vm1, %v1622_v13  ;;  %v1623_v26 = vsub.f32 %v2978_v24, %v1513_v9  ;;  %v1523_v4 = vmul.f32 0.6931472, %v2186_v42  ;;  %2199 = vlog2.f32 %v1401_v11 }
 0x2fa   :  { %v2188_v23 = vpop.eup %2187  ;;  %v1411_v52 = vpop.xlane.xlu0 %1410 }
 0x2fb   :  { %1688 = vst.msk [vmem:[%s3482_s5 + $0x88] sm:$0xff] %vm1670_vm1, %v1623_v26  ;;  %v1628_v28 = vsub.f32 %v2982_v48, %v1523_v4  ;;  %v1525_v37 = vmul.f32 0.6931472, %v2188_v23  ;;  %2201 = vlog2.f32 %v1411_v52 }
 0x2fc   :  { %v2190_v58 = vpop.eup %2189  ;;  %v1413_v0 = vpop.xlane.xlu1 %1412 }
 0x2fd   :  { %1693 = vst.msk [vmem:[%s3482_s5 + $0xb0] sm:$0xff] %vm1670_vm1, %v1628_v28  ;;  %v1629_v24 = vsub.f32 %v2986_v20, %v1525_v37  ;;  %v1519_v8 = vmul.f32 0.6931472, %v2190_v58  ;;  %2203 = vlog2.f32 %v1413_v0 }
 0x2fe   :  { %v2192_v35 = vpop.eup %2191  ;;  %v1407_v60 = vpop.xlane.xlu0 %1406 }
 0x2ff   :  { %1694 = vst.msk [vmem:[%s3482_s5 + $0xb8] sm:$0xff] %vm1670_vm1, %v1629_v24  ;;  %v1626_v48 = vsub.f32 %v2990_v30, %v1519_v8  ;;  %v1521_v22 = vmul.f32 0.6931472, %v2192_v35  ;;  %2205 = vlog2.f32 %v1407_v60 }
 0x300   :  { %v2194_v31 = vpop.eup %2193  ;;  %v1409_v12 = vpop.xlane.xlu1 %1408 }
 0x301   :  { %1691 = vst.msk [vmem:[%s3482_s5 + $0xa0] sm:$0xff] %vm1670_vm1, %v1626_v48  ;;  %v1627_v20 = vsub.f32 %v2994_v32, %v1521_v22  ;;  %v1531_v50 = vmul.f32 0.6931472, %v2194_v31  ;;  %2207 = vlog2.f32 %v1409_v12 }
 0x302   :  { %v2196_v15 = vpop.eup %2195  ;;  %v1419_v44 = vpop.xlane.xlu0 %1418 }
 0x303   :  { %1692 = vst.msk [vmem:[%s3482_s5 + $0xa8] sm:$0xff] %vm1670_vm1, %v1627_v20  ;;  %v1632_v30 = vsub.f32 %v2998_v34, %v1531_v50  ;;  %v1533_v18 = vmul.f32 0.6931472, %v2196_v15  ;;  %2209 = vlog2.f32 %v1419_v44 }
 0x304   :  { %v2198_v2 = vpop.eup %2197  ;;  %v1421_v10 = vpop.xlane.xlu1 %1420 }
 0x305   :  { %1697 = vst.msk [vmem:[%s3482_s5 + $0xd0] sm:$0xff] %vm1670_vm1, %v1632_v30  ;;  %v1633_v32 = vsub.f32 %v3002_v36, %v1533_v18  ;;  %v1527_v19 = vmul.f32 0.6931472, %v2198_v2  ;;  %2211 = vlog2.f32 %v1421_v10 }
 0x306   :  { %v2200_v56 = vpop.eup %2199  ;;  %v1415_v16 = vpop.xlane.xlu0 %1414 }
 0x307   :  { %1698 = vst.msk [vmem:[%s3482_s5 + $0xd8] sm:$0xff] %vm1670_vm1, %v1633_v32  ;;  %v1630_v34 = vsub.f32 %v3006_v39, %v1527_v19  ;;  %v1529_v40 = vmul.f32 0.6931472, %v2200_v56  ;;  %2213 = vlog2.f32 %v1415_v16 }
 0x308   :  { %v2202_v54 = vpop.eup %2201  ;;  %v1417_v46 = vpop.xlane.xlu1 %1416 }
 0x309   :  { %1695 = vst.msk [vmem:[%s3482_s5 + $0xc0] sm:$0xff] %vm1670_vm1, %v1630_v34  ;;  %v1631_v36 = vsub.f32 %v3010_v41, %v1529_v40  ;;  %v1539_v27 = vmul.f32 0.6931472, %v2202_v54  ;;  %2215 = vlog2.f32 %v1417_v46 }
 0x30a   :  { %v2204_v13 = vpop.eup %2203  ;;  %v1427_v9 = vpop.xlane.xlu0 %1426 }
 0x30b   :  { %1696 = vst.msk [vmem:[%s3482_s5 + $0xc8] sm:$0xff] %vm1670_vm1, %v1631_v36  ;;  %v1636_v39 = vsub.f32 %v3014_v43, %v1539_v27  ;;  %v1541_v42 = vmul.f32 0.6931472, %v2204_v13  ;;  %2217 = vlog2.f32 %v1427_v9 }
 0x30c   :  { %v2206_v11 = vpop.eup %2205  ;;  %v1429_v26 = vpop.xlane.xlu1 %1428 }
 0x30d   :  { %1701 = vst.msk [vmem:[%s3482_s5 + $0xf0] sm:$0xff] %vm1670_vm1, %v1636_v39  ;;  %v1637_v41 = vsub.f32 %v3018_v45, %v1541_v42  ;;  %v1535_v4 = vmul.f32 0.6931472, %v2206_v11  ;;  %2219 = vlog2.f32 %v1429_v26 }
 0x30e   :  { %v2208_v23 = vpop.eup %2207  ;;  %v1423_v52 = vpop.xlane.xlu0 %1422 }
 0x30f   :  { %1702 = vst.msk [vmem:[%s3482_s5 + $0xf8] sm:$0xff] %vm1670_vm1, %v1637_v41  ;;  %v1634_v43 = vsub.f32 %v3022_v47, %v1535_v4  ;;  %v1537_v28 = vmul.f32 0.6931472, %v2208_v23  ;;  %2221 = vlog2.f32 %v1423_v52 }
 0x310   :  { %v2210_v37 = vpop.eup %2209  ;;  %v1425_v58 = vpop.xlane.xlu1 %1424 }
 0x311   :  { %1699 = vst.msk [vmem:[%s3482_s5 + $0xe0] sm:$0xff] %vm1670_vm1, %v1634_v43  ;;  %v1635_v45 = vsub.f32 %v3026_v49, %v1537_v28  ;;  %v1547_v0 = vmul.f32 0.6931472, %v2210_v37  ;;  %2223 = vlog2.f32 %v1425_v58 }
 0x312   :  { %v2212_v24 = vpop.eup %2211  ;;  %v1435_v8 = vpop.xlane.xlu0 %1434 }
 0x313   :  { %1700 = vst.msk [vmem:[%s3482_s5 + $0xe8] sm:$0xff] %vm1670_vm1, %v1635_v45  ;;  %v1640_v47 = vsub.f32 %v3030_v51, %v1547_v0  ;;  %v1549_v35 = vmul.f32 0.6931472, %v2212_v24  ;;  %2225 = vlog2.f32 %v1435_v8 }
 0x314   :  { %v2214_v60 = vpop.eup %2213  ;;  %v1437_v48 = vpop.xlane.xlu1 %1436 }
 0x315   :  { %1705 = vst.msk [vmem:[%s3482_s5 + $0x110] sm:$0xff] %vm1670_vm1, %v1640_v47  ;;  %v1641_v49 = vsub.f32 %v3034_v53, %v1549_v35  ;;  %v1543_v22 = vmul.f32 0.6931472, %v2214_v60  ;;  %2227 = vlog2.f32 %v1437_v48 }
 0x316   :  { %v2216_v31 = vpop.eup %2215  ;;  %v1431_v12 = vpop.xlane.xlu0 %1430 }
 0x317   :  { %1706 = vst.msk [vmem:[%s3482_s5 + $0x118] sm:$0xff] %vm1670_vm1, %v1641_v49  ;;  %v1638_v51 = vsub.f32 %v3038_v55, %v1543_v22  ;;  %v1545_v20 = vmul.f32 0.6931472, %v2216_v31  ;;  %2229 = vlog2.f32 %v1431_v12 }
 0x318   :  { %v2218_v50 = vpop.eup %2217  ;;  %v1433_v15 = vpop.xlane.xlu1 %1432 }
 0x319   :  { %1703 = vst.msk [vmem:[%s3482_s5 + $0x100] sm:$0xff] %vm1670_vm1, %v1638_v51  ;;  %v1639_v53 = vsub.f32 %v3042_v57, %v1545_v20  ;;  %v1555_v44 = vmul.f32 0.6931472, %v2218_v50  ;;  %2231 = vlog2.f32 %v1433_v15 }
 0x31a   :  { %v2220_v30 = vpop.eup %2219  ;;  %v1443_v18 = vpop.xlane.xlu0 %1442 }
 0x31b   :  { %1704 = vst.msk [vmem:[%s3482_s5 + $0x108] sm:$0xff] %vm1670_vm1, %v1639_v53  ;;  %v1644_v55 = vsub.f32 %v3046_v59, %v1555_v44  ;;  %v1557_v2 = vmul.f32 0.6931472, %v2220_v30  ;;  %2233 = vlog2.f32 %v1443_v18  ;;  %v3545_v30 = vld [vmem:[#allocation16_spill] sm:$0xff] }
 0x31c   :  { %v2222_v10 = vpop.eup %2221  ;;  %v1445_v32 = vpop.xlane.xlu1 %1444 }
 0x31d   :  { %1709 = vst.msk [vmem:[%s3482_s5 + $0x130] sm:$0xff] %vm1670_vm1, %v1644_v55  ;;  %v1645_v57 = vsub.f32 %v3050_v61, %v1557_v2  ;;  %v1551_v19 = vmul.f32 0.6931472, %v2222_v10  ;;  %2235 = vlog2.f32 %v1445_v32  ;;  %v3546_v32 = vld [vmem:[#allocation17_spill] sm:$0xff] }
 0x31e   :  { %v2224_v56 = vpop.eup %2223  ;;  %v1439_v16 = vpop.xlane.xlu0 %1438 }
 0x31f   :  { %1710 = vst.msk [vmem:[%s3482_s5 + $0x138] sm:$0xff] %vm1670_vm1, %v1645_v57  ;;  %v1642_v59 = vsub.f32 %v3054_v63, %v1551_v19  ;;  %v1553_v34 = vmul.f32 0.6931472, %v2224_v56  ;;  %2237 = vlog2.f32 %v1439_v16  ;;  %v3547_v16 = vld [vmem:[#allocation18_spill] sm:$0xff] }
 0x320   :  { %v2226_v40 = vpop.eup %2225  ;;  %v1441_v54 = vpop.xlane.xlu1 %1440 }
 0x321   :  { %1707 = vst.msk [vmem:[%s3482_s5 + $0x120] sm:$0xff] %vm1670_vm1, %v1642_v59  ;;  %v1643_v61 = vsub.f32 %v3058_v1, %v1553_v34  ;;  %v1563_v46 = vmul.f32 0.6931472, %v2226_v40  ;;  %2239 = vlog2.f32 %v1441_v54  ;;  %v3548_v54 = vld [vmem:[#allocation2_spill] sm:$0xff] }
 0x322   :  { %v2228_v36 = vpop.eup %2227  ;;  %v1451_v27 = vpop.xlane.xlu0 %1450 }
 0x323   :  { %1708 = vst.msk [vmem:[%s3482_s5 + $0x128] sm:$0xff] %vm1670_vm1, %v1643_v61  ;;  %v1648_v63 = vsub.f32 %v3062_v3, %v1563_v46  ;;  %v1565_v13 = vmul.f32 0.6931472, %v2228_v36  ;;  %2241 = vlog2.f32 %v1451_v27 }
 0x324   :  { %v2230_v9 = vpop.eup %2229  ;;  %v1453_v39 = vpop.xlane.xlu1 %1452 }
 0x325   :  { %1713 = vst.msk [vmem:[%s3482_s5 + $0x150] sm:$0xff] %vm1670_vm1, %v1648_v63  ;;  %v1649_v1 = vsub.f32 %v3066_v5, %v1565_v13  ;;  %v1559_v42 = vmul.f32 0.6931472, %v2230_v9  ;;  %2243 = vlog2.f32 %v1453_v39  ;;  %v3549_v63 = vld [vmem:[#allocation3_spill] sm:$0xff] }
 0x326   :  { %v2232_v11 = vpop.eup %2231  ;;  %v1447_v26 = vpop.xlane.xlu0 %1446 }
 0x327   :  { %1714 = vst.msk [vmem:[%s3482_s5 + $0x158] sm:$0xff] %vm1670_vm1, %v1649_v1  ;;  %v1646_v3 = vsub.f32 %v3070_v7, %v1559_v42  ;;  %v1561_v41 = vmul.f32 0.6931472, %v2232_v11  ;;  %2245 = vlog2.f32 %v1447_v26  ;;  %v3550_v42 = vld [vmem:[#allocation4_spill] sm:$0xff] }
 0x328   :  { %v2234_v4 = vpop.eup %2233  ;;  %v1449_v23 = vpop.xlane.xlu1 %1448 }
 0x329   :  { %1711 = vst.msk [vmem:[%s3482_s5 + $0x140] sm:$0xff] %vm1670_vm1, %v1646_v3  ;;  %v1647_v5 = vsub.f32 %v3074_v38, %v1561_v41  ;;  %v1571_v52 = vmul.f32 0.6931472, %v2234_v4  ;;  %2247 = vlog2.f32 %v1449_v23  ;;  %v3551_v4 = vld [vmem:[#allocation5_spill] sm:$0xff] }
 0x32a   :  { %v2236_v43 = vpop.eup %2235  ;;  %v1459_v28 = vpop.xlane.xlu0 %1458 }
 0x32b   :  { %1712 = vst.msk [vmem:[%s3482_s5 + $0x148] sm:$0xff] %vm1670_vm1, %v1647_v5  ;;  %v1652_v7 = vsub.f32 %v3078_v14, %v1571_v52  ;;  %v1573_v37 = vmul.f32 0.6931472, %v2236_v43  ;;  %2249 = vlog2.f32 %v1459_v28  ;;  %v3552_v28 = vld [vmem:[#allocation6_spill] sm:$0xff] }
 0x32c   :  { %v2238_v58 = vpop.eup %2237  ;;  %v1461_v45 = vpop.xlane.xlu1 %1460 }
 0x32d   :  { %1717 = vst.msk [vmem:[%s3482_s5 + $0x170] sm:$0xff] %vm1670_vm1, %v1652_v7  ;;  %v1653_v38 = vsub.f32 %v3082_v17, %v1573_v37  ;;  %v1567_v0 = vmul.f32 0.6931472, %v2238_v58  ;;  %2251 = vlog2.f32 %v1461_v45  ;;  %v3553_v45 = vld [vmem:[#allocation7_spill] sm:$0xff] }
 0x32e   :  { %v2240_v24 = vpop.eup %2239  ;;  %v1455_v8 = vpop.xlane.xlu0 %1454 }
 0x32f   :  { %1718 = vst.msk [vmem:[%s3482_s5 + $0x178] sm:$0xff] %vm1670_vm1, %v1653_v38  ;;  %v1650_v14 = vsub.f32 %v3086_v21, %v1567_v0  ;;  %v1569_v47 = vmul.f32 0.6931472, %v2240_v24  ;;  %2253 = vlog2.f32 %v1455_v8  ;;  %v3543_v21 = vld [vmem:[#allocation14_spill] sm:$0xff]  ;;  %v3554_v24 = vld [vmem:[#allocation8_spill] sm:$0xff] }
 0x330   :  { %v2242_v35 = vpop.eup %2241  ;;  %v1457_v60 = vpop.xlane.xlu1 %1456 }
 0x331   :  { %1715 = vst.msk [vmem:[%s3482_s5 + $0x160] sm:$0xff] %vm1670_vm1, %v1650_v14  ;;  %v1651_v17 = vsub.f32 %v3090_v25, %v1569_v47  ;;  %v1579_v48 = vmul.f32 0.6931472, %v2242_v35  ;;  %2255 = vlog2.f32 %v1457_v60  ;;  %v3544_v25 = vld [vmem:[#allocation15_spill] sm:$0xff] }
 0x332   :  { %v2244_v49 = vpop.eup %2243  ;;  %v1467_v22 = vpop.xlane.xlu0 %1466 }
 0x333   :  { %1716 = vst.msk [vmem:[%s3482_s5 + $0x168] sm:$0xff] %vm1670_vm1, %v1651_v17  ;;  %v1656_v31 = vsub.f32 %v3543_v21, %v1579_v48  ;;  %v1581_v12 = vmul.f32 0.6931472, %v2244_v49  ;;  %2257 = vlog2.f32 %v1467_v22 }
 0x334   :  { %v2246_v51 = vpop.eup %2245  ;;  %v1469_v20 = vpop.xlane.xlu1 %1468 }
 0x335   :  { %1721 = vst.msk [vmem:[%s3482_s5 + $0x190] sm:$0xff] %vm1670_vm1, %v1656_v31  ;;  %v1657_v50 = vsub.f32 %v3544_v25, %v1581_v12  ;;  %v1575_v15 = vmul.f32 0.6931472, %v2246_v51  ;;  %2259 = vlog2.f32 %v1469_v20 }
 0x336   :  { %v2248_v53 = vpop.eup %2247  ;;  %v1463_v44 = vpop.xlane.xlu0 %1462 }
 0x337   :  { %1722 = vst.msk [vmem:[%s3482_s5 + $0x198] sm:$0xff] %vm1670_vm1, %v1657_v50  ;;  %v1654_v18 = vsub.f32 %v3545_v30, %v1575_v15  ;;  %v1577_v55 = vmul.f32 0.6931472, %v2248_v53  ;;  %2261 = vlog2.f32 %v1463_v44 }
 0x338   :  { %v2250_v2 = vpop.eup %2249  ;;  %v1465_v10 = vpop.xlane.xlu1 %1464 }
 0x339   :  { %1719 = vst.msk [vmem:[%s3482_s5 + $0x180] sm:$0xff] %vm1670_vm1, %v1654_v18  ;;  %v1655_v57 = vsub.f32 %v3546_v32, %v1577_v55  ;;  %v1587_v19 = vmul.f32 0.6931472, %v2250_v2  ;;  %2263 = vlog2.f32 %v1465_v10 }
 0x33a   :  { %v2252_v56 = vpop.eup %2251 }
 0x33b   :  { %1720 = vst.msk [vmem:[%s3482_s5 + $0x188] sm:$0xff] %vm1670_vm1, %v1655_v57  ;;  %v1660_v59 = vsub.f32 %v3547_v16, %v1587_v19  ;;  %v1589_v34 = vmul.f32 0.6931472, %v2252_v56 }
 0x33c   :  { %v2254_v40 = vpop.eup %2253 }
 0x33d   :  { %1725 = vst.msk [vmem:[%s3482_s5 + $0x1b0] sm:$0xff] %vm1670_vm1, %v1660_v59  ;;  %v1661_v61 = vsub.f32 %v3548_v54, %v1589_v34  ;;  %v1583_v46 = vmul.f32 0.6931472, %v2254_v40 }
 0x33e   :  { %v2256_v36 = vpop.eup %2255  ;;  %v1471_v27 = vpop.xlane.xlu0 %1470 }
 0x33f   :  { %1726 = vst.msk [vmem:[%s3482_s5 + $0x1b8] sm:$0xff] %vm1670_vm1, %v1661_v61  ;;  %v1658_v13 = vsub.f32 %v3549_v63, %v1583_v46  ;;  %v1585_v9 = vmul.f32 0.6931472, %v2256_v36  ;;  %2265 = vlog2.f32 %v1471_v27 }
 0x340   :  { %v2258_v39 = vpop.eup %2257  ;;  %v1473_v1 = vpop.xlane.xlu1 %1472 }
 0x341   :  { %1723 = vst.msk [vmem:[%s3482_s5 + $0x1a0] sm:$0xff] %vm1670_vm1, %v1658_v13  ;;  %v1659_v11 = vsub.f32 %v3550_v42, %v1585_v9  ;;  %v1595_v26 = vmul.f32 0.6931472, %v2258_v39  ;;  %2267 = vlog2.f32 %v1473_v1 }
 0x342   :  { %v2260_v3 = vpop.eup %2259  ;;  %v1475_v41 = vpop.xlane.xlu0 %1474 }
 0x343   :  { %1724 = vst.msk [vmem:[%s3482_s5 + $0x1a8] sm:$0xff] %vm1670_vm1, %v1659_v11  ;;  %v1664_v23 = vsub.f32 %v3551_v4, %v1595_v26  ;;  %v1597_v5 = vmul.f32 0.6931472, %v2260_v3  ;;  %2269 = vlog2.f32 %v1475_v41 }
 0x344   :  { %v2262_v52 = vpop.eup %2261  ;;  %v1477_v43 = vpop.xlane.xlu1 %1476 }
 0x345   :  { %1729 = vst.msk [vmem:[%s3482_s5 + $0x1d0] sm:$0xff] %vm1670_vm1, %v1664_v23  ;;  %v1665_v7 = vsub.f32 %v3552_v28, %v1597_v5  ;;  %v1591_v37 = vmul.f32 0.6931472, %v2262_v52  ;;  %2271 = vlog2.f32 %v1477_v43 }
 0x346   :  { %v2264_v58 = vpop.eup %2263 }
 0x347   :  { %1730 = vst.msk [vmem:[%s3482_s5 + $0x1d8] sm:$0xff] %vm1670_vm1, %v1665_v7  ;;  %v1662_v38 = vsub.f32 %v3553_v45, %v1591_v37  ;;  %v1593_v0 = vmul.f32 0.6931472, %v2264_v58 }
 0x349   :  { %1727 = vst.msk [vmem:[%s3482_s5 + $0x1c0] sm:$0xff] %vm1670_vm1, %v1662_v38  ;;  %v1663_v8 = vsub.f32 %v3554_v24, %v1593_v0 }
 0x34b   :  { %1728 = vst.msk [vmem:[%s3482_s5 + $0x1c8] sm:$0xff] %vm1670_vm1, %v1663_v8 }
 0x34c   :  { %v2266_v14 = vpop.eup %2265 }
 0x34d   :  { %v1599_v47 = vmul.f32 0.6931472, %v2266_v14 }
 0x34e   :  { %v2268_v35 = vpop.eup %2267 }
 0x34f   :  { %v1666_v60 = vsub.f32 %v3145_v33, %v1599_v47  ;;  %v1601_v17 = vmul.f32 0.6931472, %v2268_v35 }
 0x350   :  { %v2270_v48 = vpop.eup %2269 }
 0x351   :  { %1731 = vst.msk [vmem:[%s3482_s5 + $0x1e0] sm:$0xff] %vm1670_vm1, %v1666_v60  ;;  %v1667_v49 = vsub.f32 %v3152_v29, %v1601_v17  ;;  %v1603_v22 = vmul.f32 0.6931472, %v2270_v48 }
 0x352   :  { %v2272_v21 = vpop.eup %2271 }
 0x353   :  { %1732 = vst.msk [vmem:[%s3482_s5 + $0x1e8] sm:$0xff] %vm1670_vm1, %v1667_v49  ;;  %v1668_v31 = vsub.f32 %v3142_v6, %v1603_v22  ;;  %v1605_v12 = vmul.f32 0.6931472, %v2272_v21 }
 0x355   :  { %1733 = vst.msk [vmem:[%s3482_s5 + $0x1f0] sm:$0xff] %vm1670_vm1, %v1668_v31  ;;  %v1669_v33 = vsub.f32 %v3148_v62, %v1605_v12 }
 0x357   :  { %1734 = vst.msk [vmem:[%s3482_s5 + $0x1f8] sm:$0xff] %vm1670_vm1, %v1669_v33 }

</bundles_post_ra>
